<compile_context>
chip_gen: v6e
topology: v6e:2x2x1
jax: 0.10.0
libtpu: 0.0.40
codegen_flags: <defaults>
</compile_context>

<pallas_src>
import functools

import jax
import jax.numpy as jnp
from jax import lax
from jax.experimental import pallas as pl
from jax.experimental.pallas import tpu as pltpu

# ---------------- scaled-down "base"-like config ----------------
PATCH = 14
IMG_SHAPE = (28, 42)          # must be multiples of 14 (original: (224, 280))
EMBED_DIM = 128               # original "base": 768; 128 keeps blocks lane-dense
DEPTH = 12                    # forward uses intermediate_layers[-1] == block 11
NUM_HEADS = 4
MLP_HIDDEN = 4 * EMBED_DIM
LORA_R = 4
LORA_ALPHA = 1                # LoraLinear default -> scaling = alpha / r
LN_EPS = 1e-6
INTERMEDIATE_LAYERS = [2, 5, 8, 11]   # forward only uses the last one

_VMEM = pl.BlockSpec(memory_space=pltpu.MemorySpace.VMEM)


# ---------------- in-kernel helpers ----------------
def _layernorm(x, g, b, eps):
    # x: (M, D) f32, g/b: (1, D) f32
    mu = jnp.mean(x, axis=-1, keepdims=True)
    var = jnp.mean((x - mu) ** 2, axis=-1, keepdims=True)
    return (x - mu) * lax.rsqrt(var + eps) * g + b


def _gelu_tanh(x):
    # tanh approximation of nn.GELU (exact erf); max abs err ~1e-3 << bf16 noise.
    # TODO(synk): exact-erf GELU would need an erf polynomial (more VPU work on v5e).
    c = 0.7978845608028654  # sqrt(2/pi)
    return 0.5 * x * (1.0 + jnp.tanh(c * (x + 0.044715 * x * x * x)))


def _bdot(a, b):
    # bf16 MXU matmul, f32 accumulation.
    return jnp.dot(a, b, preferred_element_type=jnp.float32)


# ---------------- Pallas kernels ----------------
def _matmul_kernel(x_ref, w_ref, o_ref):
    # bilinear resize as a single flattened kron-matrix matmul (bf16 operands).
    o_ref[...] = _bdot(x_ref[...], w_ref[...]).astype(o_ref.dtype)


def bilinear_resize_flat(x_flat_bf16, kt_bf16):
    M = x_flat_bf16.shape[0]
    N = kt_bf16.shape[1]
    return pl.pallas_call(
        _matmul_kernel,
        out_shape=jax.ShapeDtypeStruct((M, N), jnp.float32),
        in_specs=[_VMEM, _VMEM],
        out_specs=_VMEM,
    )(x_flat_bf16, kt_bf16)


def _linear_kernel(x_ref, w_ref, b_ref, o_ref):
    # x/w already bf16 (cast on host); f32 accumulation + f32 bias.
    o_ref[...] = (_bdot(x_ref[...], w_ref[...]) + b_ref[...]).astype(o_ref.dtype)


def pallas_linear(x2d_bf16, w_bf16, b):
    M = x2d_bf16.shape[0]
    N = w_bf16.shape[1]
    return pl.pallas_call(
        _linear_kernel,
        out_shape=jax.ShapeDtypeStruct((M, N), jnp.float32),
        in_specs=[_VMEM, _VMEM, _VMEM],
        out_specs=_VMEM,
    )(x2d_bf16, w_bf16, b.reshape(1, N))


def _encoder_kernel(tok_ref, mask_ref,
                    ln1_g_ref, ln1_b_ref, w_qkv_ref, b_qkv_ref,
                    w_proj_ref, b_proj_ref, ln2_g_ref, ln2_b_ref,
                    w_fc1_ref, b_fc1_ref, w_fc2_ref, b_fc2_ref,
                    lnf_g_ref, lnf_b_ref,
                    out_ref,
                    res_ref,
                    *, num_heads, head_dim, depth, eps):
    layer = pl.program_id(0)
    d_model = num_heads * head_dim

    # Seed the VMEM-resident residual stream at the first layer.
    @pl.when(layer == 0)
    def _():
        res_ref[...] = tok_ref[...]

    x = res_ref[...]                       # (M, D) f32 residual stream
    mask = mask_ref[...]                   # (M, M) f32 additive block-diag mask

    # ---- attention sub-block ----
    h = _layernorm(x, ln1_g_ref[0], ln1_b_ref[0], eps)
    # 1/sqrt(head_dim) is pre-folded into the q columns of w_qkv / b_qkv.
    qkv = _bdot(h.astype(jnp.bfloat16), w_qkv_ref[0]) + b_qkv_ref[0]   # (M, 3D) f32
    qkv_b = qkv.astype(jnp.bfloat16)       # single cast reused by all heads

    heads = []
    for i in range(num_heads):
        lo, hi = i * head_dim, (i + 1) * head_dim
        q = qkv_b[:, lo:hi]
        k = qkv_b[:, d_model + lo:d_model + hi]
        v = qkv_b[:, 2 * d_model + lo:2 * d_model + hi]
        # s = q @ k^T  (bf16 operands, f32 accumulation), block-diag batch mask.
        s = lax.dot_general(q, k, (((1,), (1,)), ((), ())),
                            preferred_element_type=jnp.float32) + mask
        s = s - jnp.max(s, axis=-1, keepdims=True)
        p = jnp.exp(s)
        p = p * pl.reciprocal(jnp.sum(p, axis=-1, keepdims=True), approx=True)
        heads.append(_bdot(p.astype(jnp.bfloat16), v))                 # (M, dh) f32
    attn = jnp.concatenate(heads, axis=-1).astype(jnp.bfloat16)        # (M, D)
    x = x + _bdot(attn, w_proj_ref[0]) + b_proj_ref[0]                 # one proj GEMM

    # ---- MLP sub-block (LoRA A/B pre-folded into w_fc1/w_fc2; dropout p=0) ----
    h = _layernorm(x, ln2_g_ref[0], ln2_b_ref[0], eps).astype(jnp.bfloat16)
    hid = _bdot(h, w_fc1_ref[0]) + b_fc1_ref[0]
    hid = _gelu_tanh(hid).astype(jnp.bfloat16)
    x = x + _bdot(hid, w_fc2_ref[0]) + b_fc2_ref[0]

    # Final LayerNorm (get_intermediate_layers applies self.norm) fused at the
    # last depth step; output block is written exactly once.
    @pl.when(layer == depth - 1)
    def _():
        out_ref[...] = _layernorm(x, lnf_g_ref[0], lnf_b_ref[0], eps).astype(out_ref.dtype)

    @pl.when(layer < depth - 1)
    def _():
        res_ref[...] = x


def encoder_forward(tok2d, mask_bias, p):
    M, D = tok2d.shape
    dh = D // NUM_HEADS
    kernel = functools.partial(
        _encoder_kernel, num_heads=NUM_HEADS, head_dim=dh, depth=DEPTH, eps=LN_EPS)

    def const_spec(arr):
        # Whole-array block, constant index map -> loaded once, stays resident.
        return pl.BlockSpec(arr.shape, lambda l, _nd=arr.ndim: (0,) * _nd)

    def layer_spec(arr):
        # Per-layer weights stacked on a leading "layer" axis, streamed by depth.
        return pl.BlockSpec((1,) + arr.shape[1:], lambda l: (l, 0, 0))

    weights = [
        p['ln1_g'], p['ln1_b'], p['w_qkv'], p['b_qkv'], p['w_proj'], p['b_proj'],
        p['ln2_g'], p['ln2_b'], p['w_fc1_eff'], p['b_fc1'], p['w_fc2_eff'], p['b_fc2'],
    ]
    in_specs = ([const_spec(tok2d), const_spec(mask_bias)]
                + [layer_spec(w) for w in weights]
                + [const_spec(p['ln_f_g']), const_spec(p['ln_f_b'])])

    # TODO(synk): at real "base" scale on v7x (64 MiB VMEM), split fc1/fc2 over a
    # hidden-dim grid axis and shard token rows across the 2 TensorCores.
    return pl.pallas_call(
        kernel,
        out_shape=jax.ShapeDtypeStruct((M, D), jnp.float32),
        grid=(DEPTH,),
        in_specs=in_specs,
        out_specs=pl.BlockSpec((M, D), lambda l: (0, 0)),
        scratch_shapes=[pltpu.VMEM((M, D), jnp.float32)],   # residual stream carry
        compiler_params=pltpu.CompilerParams(
            dimension_semantics=("arbitrary",),              # depth is a carry axis
            vmem_limit_bytes=32 * 1024 * 1024),
    )(tok2d, mask_bias, *weights, p['ln_f_g'], p['ln_f_b'])


# ---------------- glue (plain JAX, tiny / layout-only) ----------------
def interp_matrix(out_size, in_size):
    """Row-stochastic bilinear interpolation matrix, align_corners=True."""
    if in_size == 1 or out_size == 1:
        return jnp.ones((out_size, in_size), jnp.float32) / in_size
    idx = jnp.arange(out_size, dtype=jnp.float32)
    src = idx * (in_size - 1) / (out_size - 1)
    lo = jnp.clip(jnp.floor(src).astype(jnp.int32), 0, in_size - 2)
    frac = src - lo.astype(jnp.float32)
    m = (jax.nn.one_hot(lo, in_size) * (1.0 - frac)[:, None]
         + jax.nn.one_hot(lo + 1, in_size) * frac[:, None])
    return m.astype(jnp.float32)


def patchify(x):
    """NCHW image -> (B, num_patches, C*14*14), flattened in (c, i, j) order
    to match Conv2d(patch_size=14, stride=14) patch embedding."""
    B, C, H, W = x.shape
    ph, pw = H // PATCH, W // PATCH
    x = x.reshape(B, C, ph, PATCH, pw, PATCH)
    x = x.transpose(0, 2, 4, 1, 3, 5)          # (B, ph, pw, C, 14, 14)
    return x.reshape(B, ph * pw, C * PATCH * PATCH)


def forward(params, pixel_values):
    B, C, Hin, Win = pixel_values.shape
    D = EMBED_DIM
    Hout, Wout = IMG_SHAPE

    # 1) bilinear interpolate to image_shape, align_corners=True.  The separable
    #    interpolation is one kron(Rh, Rw) matrix, so the resize is ONE matmul.
    rh = interp_matrix(Hout, Hin)
    rw = interp_matrix(Wout, Win)
    kt = jnp.kron(rh, rw).T.astype(jnp.bfloat16)            # (Hin*Win, Hout*Wout)
    x_flat = pixel_values.reshape(B * C, Hin * Win).astype(jnp.bfloat16)
    x = bilinear_resize_flat(x_flat, kt).reshape(B, C, Hout, Wout)

    # 2) patch embedding (14x14 stride-14 conv == patchify + matmul), bf16 inputs.
    patches = patchify(x).astype(jnp.bfloat16)               # (B, Np, 588)
    Np = patches.shape[1]
    tok = pallas_linear(patches.reshape(B * Np, -1), params['wp'], params['bp'])
    tok = tok.reshape(B, Np, D)

    # 3) prepend cls token, add positional embedding (layout glue).
    cls = jnp.broadcast_to(params['cls'], (B, 1, D)).astype(jnp.float32)
    tok = jnp.concatenate([cls, tok], axis=1) + params['pos']
    Ntok = Np + 1
    M = B * Ntok

    # 4+5) fused 12-layer encoder + final norm, grid=(DEPTH,): batch flattened
    #      into tokens, block-diagonal mask keeps per-image attention exact.
    bid = jnp.arange(M, dtype=jnp.int32) // Ntok
    mask_bias = jnp.where(bid[:, None] == bid[None, :], 0.0, -1e30).astype(jnp.float32)
    feats = encoder_forward(tok.reshape(M, D), mask_bias, params)   # (M, D)
    feats = feats.reshape(B, Ntok, D)[:, 1:, :]                     # drop cls token

    # 6) original: features.view(B, C, 16, 48) with 16*48 == embed_dim (768)
    return feats.reshape(B, Np, 16, D // 16)


# ---------------- deterministic synthetic parameters ----------------
def init_params(key):
    D, Hm, R = EMBED_DIM, MLP_HIDDEN, LORA_R
    dh = D // NUM_HEADS
    patch_dim = 3 * PATCH * PATCH
    n_patch = (IMG_SHAPE[0] // PATCH) * (IMG_SHAPE[1] // PATCH)
    keys = jax.random.split(key, 11)
    bf = jnp.bfloat16
    scaling = LORA_ALPHA / LORA_R

    def nrm(k, shape, s=0.02):
        return s * jax.random.normal(k, shape, jnp.float32)

    # Fold the 1/sqrt(head_dim) attention scale into the q columns (weight+bias).
    qscale = jnp.concatenate(
        [jnp.full((D,), 1.0 / (dh ** 0.5), jnp.float32), jnp.ones((2 * D,), jnp.float32)])
    w_qkv = nrm(keys[3], (DEPTH, D, 3 * D)) * qscale[None, None, :]
    b_qkv = jnp.zeros((DEPTH, 1, 3 * D), jnp.float32) * qscale[None, None, :]

    # LoRA factors (A^T: (in, r), B^T: (r, out)); true LoRA init has B == 0 but we
    # use small nonzero values to exercise the path.  For the forward pass
    # LoraLinear is exactly  x @ (W + scaling * A@B) + b,  so fold at init.
    # TODO(synk): training would need the A/B matmuls kept separate in-kernel.
    w_fc1 = nrm(keys[5], (DEPTH, D, Hm))
    a_fc1 = nrm(keys[6], (DEPTH, D, R))
    bb_fc1 = nrm(keys[7], (DEPTH, R, Hm))
    w_fc2 = nrm(keys[8], (DEPTH, Hm, D))
    a_fc2 = nrm(keys[9], (DEPTH, Hm, R))
    bb_fc2 = nrm(keys[10], (DEPTH, R, D))
    w_fc1_eff = (w_fc1 + scaling * jnp.matmul(a_fc1, bb_fc1)).astype(bf)
    w_fc2_eff = (w_fc2 + scaling * jnp.matmul(a_fc2, bb_fc2)).astype(bf)

    params = {
        # Matmul weights stored bf16 (f32 accumulation in-kernel); biases/LN f32.
        'wp': nrm(keys[0], (patch_dim, D)).astype(bf),
        'bp': jnp.zeros((D,), jnp.float32),
        'cls': nrm(keys[1], (1, 1, D)),
        'pos': nrm(keys[2], (1, 1 + n_patch, D)),
        'ln_f_g': jnp.ones((1, 1, D), jnp.float32),
        'ln_f_b': jnp.zeros((1, 1, D), jnp.float32),
        # Per-layer weights stacked along a leading "layer" axis.
        'ln1_g': jnp.ones((DEPTH, 1, D), jnp.float32),
        'ln1_b': jnp.zeros((DEPTH, 1, D), jnp.float32),
        'ln2_g': jnp.ones((DEPTH, 1, D), jnp.float32),
        'ln2_b': jnp.zeros((DEPTH, 1, D), jnp.float32),
        'w_qkv': w_qkv.astype(bf),
        'b_qkv': b_qkv,
        'w_proj': nrm(keys[4], (DEPTH, D, D)).astype(bf),
        'b_proj': jnp.zeros((DEPTH, 1, D), jnp.float32),
        'w_fc1_eff': w_fc1_eff,
        'b_fc1': jnp.zeros((DEPTH, 1, Hm), jnp.float32),
        'w_fc2_eff': w_fc2_eff,
        'b_fc2': jnp.zeros((DEPTH, 1, D), jnp.float32),
    }
    return params
    # TODO(synk): pretrained_path / torch.load checkpoint loading and
    # mark_only_part_as_trainable (requires_grad bookkeeping) have no forward effect.


if __name__ == "__main__":
    key = jax.random.PRNGKey(0)
    k_in, k_par = jax.random.split(key)
    pixel_values = jax.random.normal(k_in, (2, 3, 16, 16), jnp.float32)  # NCHW
    params = init_params(k_par)

    out = jax.jit(forward)(params, pixel_values)
    out = jax.block_until_ready(out)

    n_patch = (IMG_SHAPE[0] // PATCH) * (IMG_SHAPE[1] // PATCH)
    assert out.shape == (2, n_patch, 16, EMBED_DIM // 16), out.shape
    assert out.dtype == jnp.float32
    assert bool(jnp.all(jnp.isfinite(out)))
    print("KERNEL_OK")
</pallas_src>

<mosaic_0001>
module attributes {stable_mosaic.version = 11 : i64} {
  func.func @_matmul_kernel(%arg0: memref<6x256xbf16, #tpu.memory_space<vmem>>, %arg1: memref<256x1176xbf16, #tpu.memory_space<vmem>>, %arg2: memref<6x1176xf32, #tpu.memory_space<vmem>>) attributes {dimension_semantics = [], scalar_prefetch = 0 : i64, scratch_operands = 0 : i64, tpu.core_type = #tpu.core_type<tc>} {
    %c0 = arith.constant 0 : index
    %c0_0 = arith.constant 0 : index
    %0 = vector.load %arg0[%c0, %c0_0] : memref<6x256xbf16, #tpu.memory_space<vmem>>, vector<6x256xbf16>
    %c0_1 = arith.constant 0 : index
    %c0_2 = arith.constant 0 : index
    %1 = vector.load %arg1[%c0_1, %c0_2] : memref<256x1176xbf16, #tpu.memory_space<vmem>>, vector<256x1176xbf16>
    %cst = arith.constant dense<0.000000e+00> : vector<6x1176xf32>
    %2 = tpu.matmul %0, %1, %cst {dimension_numbers = #tpu.dot_dimension_numbers<[1], [0], [0], [1], [0, 0, 1, 1], [], []>} : vector<6x256xbf16>, vector<256x1176xbf16>, vector<6x1176xf32> -> vector<6x1176xf32>
    %c0_3 = arith.constant 0 : index
    %c0_4 = arith.constant 0 : index
    %3 = vector.load %arg2[%c0_3, %c0_4] : memref<6x1176xf32, #tpu.memory_space<vmem>>, vector<6x1176xf32>
    tpu.vector_store %arg2[%c0_3, %c0_4], %2 {strides = array<i32>} : memref<6x1176xf32, #tpu.memory_space<vmem>>, vector<6x1176xf32>,
    return
  }
}

module attributes {stable_mosaic.version = 11 : i64} {
  func.func @_linear_kernel(%arg0: memref<12x588xbf16, #tpu.memory_space<vmem>>, %arg1: memref<588x128xbf16, #tpu.memory_space<vmem>>, %arg2: memref<1x128xf32, #tpu.memory_space<vmem>>, %arg3: memref<12x128xf32, #tpu.memory_space<vmem>>) attributes {dimension_semantics = [], scalar_prefetch = 0 : i64, scratch_operands = 0 : i64, tpu.core_type = #tpu.core_type<tc>} {
    %c0 = arith.constant 0 : index
    %c0_0 = arith.constant 0 : index
    %0 = vector.load %arg0[%c0, %c0_0] : memref<12x588xbf16, #tpu.memory_space<vmem>>, vector<12x588xbf16>
    %c0_1 = arith.constant 0 : index
    %c0_2 = arith.constant 0 : index
    %1 = vector.load %arg1[%c0_1, %c0_2] : memref<588x128xbf16, #tpu.memory_space<vmem>>, vector<588x128xbf16>
    %cst = arith.constant dense<0.000000e+00> : vector<12x128xf32>
    %2 = tpu.matmul %0, %1, %cst {dimension_numbers = #tpu.dot_dimension_numbers<[1], [0], [0], [1], [0, 0, 1, 1], [], []>} : vector<12x588xbf16>, vector<588x128xbf16>, vector<12x128xf32> -> vector<12x128xf32>
    %c0_3 = arith.constant 0 : index
    %c0_4 = arith.constant 0 : index
    %3 = vector.load %arg2[%c0_3, %c0_4] : memref<1x128xf32, #tpu.memory_space<vmem>>, vector<1x128xf32>
    %4 = vector.broadcast %3 : vector<1x128xf32> to vector<12x128xf32>
    %5 = arith.addf %2, %4 : vector<12x128xf32>
    %c0_5 = arith.constant 0 : index
    %c0_6 = arith.constant 0 : index
    %6 = vector.load %arg3[%c0_5, %c0_6] : memref<12x128xf32, #tpu.memory_space<vmem>>, vector<12x128xf32>
    tpu.vector_store %arg3[%c0_5, %c0_6], %5 {strides = array<i32>} : memref<12x128xf32, #tpu.memory_space<vmem>>, vector<12x128xf32>,
    return
  }
}

module attributes {stable_mosaic.version = 11 : i64} {
  func.func @_encoder_kernel(%arg0: i32, %arg1: memref<14x128xf32, #tpu.memory_space<vmem>>, %arg2: memref<14x14xf32, #tpu.memory_space<vmem>>, %arg3: memref<1x1x128xf32, #tpu.memory_space<vmem>>, %arg4: memref<1x1x128xf32, #tpu.memory_space<vmem>>, %arg5: memref<1x128x384xbf16, #tpu.memory_space<vmem>>, %arg6: memref<1x1x384xf32, #tpu.memory_space<vmem>>, %arg7: memref<1x128x128xbf16, #tpu.memory_space<vmem>>, %arg8: memref<1x1x128xf32, #tpu.memory_space<vmem>>, %arg9: memref<1x1x128xf32, #tpu.memory_space<vmem>>, %arg10: memref<1x1x128xf32, #tpu.memory_space<vmem>>, %arg11: memref<1x128x512xbf16, #tpu.memory_space<vmem>>, %arg12: memref<1x1x512xf32, #tpu.memory_space<vmem>>, %arg13: memref<1x512x128xbf16, #tpu.memory_space<vmem>>, %arg14: memref<1x1x128xf32, #tpu.memory_space<vmem>>, %arg15: memref<1x1x128xf32, #tpu.memory_space<vmem>>, %arg16: memref<1x1x128xf32, #tpu.memory_space<vmem>>, %arg17: memref<14x128xf32, #tpu.memory_space<vmem>>, %arg18: memref<14x128xf32, #tpu.memory_space<vmem>>) attributes {dimension_semantics = [#tpu.dimension_semantics<arbitrary>], iteration_bounds = array<i64: 12>, scalar_prefetch = 0 : i64, scratch_operands = 1 : i64, tpu.core_type = #tpu.core_type<tc>, window_params = [{pipeline_mode = #tpu.pipeline_mode<synchronous>, transform_indices = @transform_0, window_bounds = array<i64: 14, 128>}, {pipeline_mode = #tpu.pipeline_mode<synchronous>, transform_indices = @transform_1, window_bounds = array<i64: 14, 14>}, {transform_indices = @transform_2, window_bounds = array<i64: 1, 1, 128>}, {transform_indices = @transform_3, window_bounds = array<i64: 1, 1, 128>}, {transform_indices = @transform_4, window_bounds = array<i64: 1, 128, 384>}, {transform_indices = @transform_5, window_bounds = array<i64: 1, 1, 384>}, {transform_indices = @transform_6, window_bounds = array<i64: 1, 128, 128>}, {transform_indices = @transform_7, window_bounds = array<i64: 1, 1, 128>}, {transform_indices = @transform_8, window_bounds = array<i64: 1, 1, 128>}, {transform_indices = @transform_9, window_bounds = array<i64: 1, 1, 128>}, {transform_indices = @transform_10, window_bounds = array<i64: 1, 128, 512>}, {transform_indices = @transform_11, window_bounds = array<i64: 1, 1, 512>}, {transform_indices = @transform_12, window_bounds = array<i64: 1, 512, 128>}, {transform_indices = @transform_13, window_bounds = array<i64: 1, 1, 128>}, {pipeline_mode = #tpu.pipeline_mode<synchronous>, transform_indices = @transform_14, window_bounds = array<i64: 1, 1, 128>}, {pipeline_mode = #tpu.pipeline_mode<synchronous>, transform_indices = @transform_15, window_bounds = array<i64: 1, 1, 128>}, {pipeline_mode = #tpu.pipeline_mode<synchronous>, transform_indices = @transform_16, window_bounds = array<i64: 14, 128>}]} {
    %c0_i32 = arith.constant 0 : i32
    %0 = arith.cmpi eq, %arg0, %c0_i32 : i32
    %1 = arith.extui %0 : i1 to i32
    %c0_i32_0 = arith.constant 0 : i32
    %2 = arith.cmpi ne, %1, %c0_i32_0 : i32
    scf.if %2 {
      %c0_76 = arith.constant 0 : index
      %c0_77 = arith.constant 0 : index
      %180 = vector.load %arg1[%c0_76, %c0_77] : memref<14x128xf32, #tpu.memory_space<vmem>>, vector<14x128xf32>
      %c0_78 = arith.constant 0 : index
      %c0_79 = arith.constant 0 : index
      %181 = vector.load %arg18[%c0_78, %c0_79] : memref<14x128xf32, #tpu.memory_space<vmem>>, vector<14x128xf32>
      tpu.vector_store %arg18[%c0_78, %c0_79], %180 {strides = array<i32>} : memref<14x128xf32, #tpu.memory_space<vmem>>, vector<14x128xf32>,
    } else {
    }
    %c0 = arith.constant 0 : index
    %c0_1 = arith.constant 0 : index
    %3 = vector.load %arg18[%c0, %c0_1] : memref<14x128xf32, #tpu.memory_space<vmem>>, vector<14x128xf32>
    %c0_2 = arith.constant 0 : index
    %c0_3 = arith.constant 0 : index
    %4 = vector.load %arg2[%c0_2, %c0_3] : memref<14x14xf32, #tpu.memory_space<vmem>>, vector<14x14xf32>
    %c0_4 = arith.constant 0 : index
    %c0_5 = arith.constant 0 : index
    %c0_6 = arith.constant 0 : index
    %5 = vector.load %arg3[%c0_4, %c0_5, %c0_6] : memref<1x1x128xf32, #tpu.memory_space<vmem>>, vector<1x1x128xf32>
    %6 = vector.shape_cast %5 : vector<1x1x128xf32> to vector<1x128xf32>
    %c0_7 = arith.constant 0 : index
    %c0_8 = arith.constant 0 : index
    %c0_9 = arith.constant 0 : index
    %7 = vector.load %arg4[%c0_7, %c0_8, %c0_9] : memref<1x1x128xf32, #tpu.memory_space<vmem>>, vector<1x1x128xf32>
    %8 = vector.shape_cast %7 : vector<1x1x128xf32> to vector<1x128xf32>
    %cst = arith.constant dense<0.000000e+00> : vector<14xf32>
    %9 = vector.multi_reduction <add>, %3, %cst [1] : vector<14x128xf32> to vector<14xf32>
    %10 = vector.shape_cast %9 : vector<14xf32> to vector<14x1xf32>
    %cst_10 = arith.constant 1.280000e+02 : f32
    %11 = vector.broadcast %cst_10 : f32 to vector<14x1xf32>
    %12 = arith.divf %10, %11 : vector<14x1xf32>
    %13 = vector.broadcast %12 : vector<14x1xf32> to vector<14x128xf32>
    %14 = arith.subf %3, %13 : vector<14x128xf32>
    %15 = arith.mulf %14, %14 : vector<14x128xf32>
    %cst_11 = arith.constant dense<0.000000e+00> : vector<14xf32>
    %16 = vector.multi_reduction <add>, %15, %cst_11 [1] : vector<14x128xf32> to vector<14xf32>
    %17 = vector.shape_cast %16 : vector<14xf32> to vector<14x1xf32>
    %cst_12 = arith.constant 1.280000e+02 : f32
    %18 = vector.broadcast %cst_12 : f32 to vector<14x1xf32>
    %19 = arith.divf %17, %18 : vector<14x1xf32>
    %20 = vector.broadcast %12 : vector<14x1xf32> to vector<14x128xf32>
    %21 = arith.subf %3, %20 : vector<14x128xf32>
    %cst_13 = arith.constant 9.99999997E-7 : f32
    %22 = vector.broadcast %cst_13 : f32 to vector<14x1xf32>
    %23 = arith.addf %19, %22 : vector<14x1xf32>
    %24 = math.rsqrt %23 : vector<14x1xf32>
    %25 = vector.broadcast %24 : vector<14x1xf32> to vector<14x128xf32>
    %26 = arith.mulf %21, %25 : vector<14x128xf32>
    %27 = vector.broadcast %6 : vector<1x128xf32> to vector<14x128xf32>
    %28 = arith.mulf %26, %27 : vector<14x128xf32>
    %29 = vector.broadcast %8 : vector<1x128xf32> to vector<14x128xf32>
    %30 = arith.addf %28, %29 : vector<14x128xf32>
    %31 = arith.truncf %30 : vector<14x128xf32> to vector<14x128xbf16>
    %c0_14 = arith.constant 0 : index
    %c0_15 = arith.constant 0 : index
    %c0_16 = arith.constant 0 : index
    %32 = vector.load %arg5[%c0_14, %c0_15, %c0_16] : memref<1x128x384xbf16, #tpu.memory_space<vmem>>, vector<1x128x384xbf16>
    %33 = vector.shape_cast %32 : vector<1x128x384xbf16> to vector<128x384xbf16>
    %cst_17 = arith.constant dense<0.000000e+00> : vector<14x384xf32>
    %34 = tpu.matmul %31, %33, %cst_17 {dimension_numbers = #tpu.dot_dimension_numbers<[1], [0], [0], [1], [0, 0, 1, 1], [], []>} : vector<14x128xbf16>, vector<128x384xbf16>, vector<14x384xf32> -> vector<14x384xf32>
    %c0_18 = arith.constant 0 : index
    %c0_19 = arith.constant 0 : index
    %c0_20 = arith.constant 0 : index
    %35 = vector.load %arg6[%c0_18, %c0_19, %c0_20] : memref<1x1x384xf32, #tpu.memory_space<vmem>>, vector<1x1x384xf32>
    %36 = vector.shape_cast %35 : vector<1x1x384xf32> to vector<1x384xf32>
    %37 = vector.broadcast %36 : vector<1x384xf32> to vector<14x384xf32>
    %38 = arith.addf %34, %37 : vector<14x384xf32>
    %39 = arith.truncf %38 : vector<14x384xf32> to vector<14x384xbf16>
    %40 = vector.extract_strided_slice %39 {offsets = [0, 0], sizes = [14, 32], strides = [1, 1]} : vector<14x384xbf16> to vector<14x32xbf16>
    %41 = vector.extract_strided_slice %39 {offsets = [0, 128], sizes = [14, 32], strides = [1, 1]} : vector<14x384xbf16> to vector<14x32xbf16>
    %42 = vector.extract_strided_slice %39 {offsets = [0, 256], sizes = [14, 32], strides = [1, 1]} : vector<14x384xbf16> to vector<14x32xbf16>
    %cst_21 = arith.constant dense<0.000000e+00> : vector<14x14xf32>
    %43 = tpu.matmul %40, %41, %cst_21 {dimension_numbers = #tpu.dot_dimension_numbers<[1], [1], [0], [0], [0, 0, 1, 0], [], []>} : vector<14x32xbf16>, vector<14x32xbf16>, vector<14x14xf32> -> vector<14x14xf32>
    %44 = arith.addf %43, %4 : vector<14x14xf32>
    %cst_22 = arith.constant dense<0xFF800000> : vector<14xf32>
    %45 = vector.multi_reduction <maximumf>, %44, %cst_22 [1] : vector<14x14xf32> to vector<14xf32>
    %46 = vector.shape_cast %45 : vector<14xf32> to vector<14x1xf32>
    %47 = vector.broadcast %46 : vector<14x1xf32> to vector<14x14xf32>
    %48 = arith.subf %44, %47 : vector<14x14xf32>
    %49 = math.exp %48 : vector<14x14xf32>
    %cst_23 = arith.constant dense<0.000000e+00> : vector<14xf32>
    %50 = vector.multi_reduction <add>, %49, %cst_23 [1] : vector<14x14xf32> to vector<14xf32>
    %51 = vector.shape_cast %50 : vector<14xf32> to vector<14x1xf32>
    %52 = tpu.reciprocal %51 {approx = true} : vector<14x1xf32> -> vector<14x1xf32>
    %53 = vector.broadcast %52 : vector<14x1xf32> to vector<14x14xf32>
    %54 = arith.mulf %49, %53 : vector<14x14xf32>
    %55 = arith.truncf %54 : vector<14x14xf32> to vector<14x14xbf16>
    %cst_24 = arith.constant dense<0.000000e+00> : vector<14x32xf32>
    %56 = tpu.matmul %55, %42, %cst_24 {dimension_numbers = #tpu.dot_dimension_numbers<[1], [0], [0], [1], [0, 0, 1, 1], [], []>} : vector<14x14xbf16>, vector<14x32xbf16>, vector<14x32xf32> -> vector<14x32xf32>
    %57 = vector.extract_strided_slice %39 {offsets = [0, 32], sizes = [14, 32], strides = [1, 1]} : vector<14x384xbf16> to vector<14x32xbf16>
    %58 = vector.extract_strided_slice %39 {offsets = [0, 160], sizes = [14, 32], strides = [1, 1]} : vector<14x384xbf16> to vector<14x32xbf16>
    %59 = vector.extract_strided_slice %39 {offsets = [0, 288], sizes = [14, 32], strides = [1, 1]} : vector<14x384xbf16> to vector<14x32xbf16>
    %cst_25 = arith.constant dense<0.000000e+00> : vector<14x14xf32>
    %60 = tpu.matmul %57, %58, %cst_25 {dimension_numbers = #tpu.dot_dimension_numbers<[1], [1], [0], [0], [0, 0, 1, 0], [], []>} : vector<14x32xbf16>, vector<14x32xbf16>, vector<14x14xf32> -> vector<14x14xf32>
    %61 = arith.addf %60, %4 : vector<14x14xf32>
    %cst_26 = arith.constant dense<0xFF800000> : vector<14xf32>
    %62 = vector.multi_reduction <maximumf>, %61, %cst_26 [1] : vector<14x14xf32> to vector<14xf32>
    %63 = vector.shape_cast %62 : vector<14xf32> to vector<14x1xf32>
    %64 = vector.broadcast %63 : vector<14x1xf32> to vector<14x14xf32>
    %65 = arith.subf %61, %64 : vector<14x14xf32>
    %66 = math.exp %65 : vector<14x14xf32>
    %cst_27 = arith.constant dense<0.000000e+00> : vector<14xf32>
    %67 = vector.multi_reduction <add>, %66, %cst_27 [1] : vector<14x14xf32> to vector<14xf32>
    %68 = vector.shape_cast %67 : vector<14xf32> to vector<14x1xf32>
    %69 = tpu.reciprocal %68 {approx = true} : vector<14x1xf32> -> vector<14x1xf32>
    %70 = vector.broadcast %69 : vector<14x1xf32> to vector<14x14xf32>
    %71 = arith.mulf %66, %70 : vector<14x14xf32>
    %72 = arith.truncf %71 : vector<14x14xf32> to vector<14x14xbf16>
    %cst_28 = arith.constant dense<0.000000e+00> : vector<14x32xf32>
    %73 = tpu.matmul %72, %59, %cst_28 {dimension_numbers = #tpu.dot_dimension_numbers<[1], [0], [0], [1], [0, 0, 1, 1], [], []>} : vector<14x14xbf16>, vector<14x32xbf16>, vector<14x32xf32> -> vector<14x32xf32>
    %74 = vector.extract_strided_slice %39 {offsets = [0, 64], sizes = [14, 32], strides = [1, 1]} : vector<14x384xbf16> to vector<14x32xbf16>
    %75 = vector.extract_strided_slice %39 {offsets = [0, 192], sizes = [14, 32], strides = [1, 1]} : vector<14x384xbf16> to vector<14x32xbf16>
    %76 = vector.extract_strided_slice %39 {offsets = [0, 320], sizes = [14, 32], strides = [1, 1]} : vector<14x384xbf16> to vector<14x32xbf16>
    %cst_29 = arith.constant dense<0.000000e+00> : vector<14x14xf32>
    %77 = tpu.matmul %74, %75, %cst_29 {dimension_numbers = #tpu.dot_dimension_numbers<[1], [1], [0], [0], [0, 0, 1, 0], [], []>} : vector<14x32xbf16>, vector<14x32xbf16>, vector<14x14xf32> -> vector<14x14xf32>
    %78 = arith.addf %77, %4 : vector<14x14xf32>
    %cst_30 = arith.constant dense<0xFF800000> : vector<14xf32>
    %79 = vector.multi_reduction <maximumf>, %78, %cst_30 [1] : vector<14x14xf32> to vector<14xf32>
    %80 = vector.shape_cast %79 : vector<14xf32> to vector<14x1xf32>
    %81 = vector.broadcast %80 : vector<14x1xf32> to vector<14x14xf32>
    %82 = arith.subf %78, %81 : vector<14x14xf32>
    %83 = math.exp %82 : vector<14x14xf32>
    %cst_31 = arith.constant dense<0.000000e+00> : vector<14xf32>
    %84 = vector.multi_reduction <add>, %83, %cst_31 [1] : vector<14x14xf32> to vector<14xf32>
    %85 = vector.shape_cast %84 : vector<14xf32> to vector<14x1xf32>
    %86 = tpu.reciprocal %85 {approx = true} : vector<14x1xf32> -> vector<14x1xf32>
    %87 = vector.broadcast %86 : vector<14x1xf32> to vector<14x14xf32>
    %88 = arith.mulf %83, %87 : vector<14x14xf32>
    %89 = arith.truncf %88 : vector<14x14xf32> to vector<14x14xbf16>
    %cst_32 = arith.constant dense<0.000000e+00> : vector<14x32xf32>
    %90 = tpu.matmul %89, %76, %cst_32 {dimension_numbers = #tpu.dot_dimension_numbers<[1], [0], [0], [1], [0, 0, 1, 1], [], []>} : vector<14x14xbf16>, vector<14x32xbf16>, vector<14x32xf32> -> vector<14x32xf32>
    %91 = vector.extract_strided_slice %39 {offsets = [0, 96], sizes = [14, 32], strides = [1, 1]} : vector<14x384xbf16> to vector<14x32xbf16>
    %92 = vector.extract_strided_slice %39 {offsets = [0, 224], sizes = [14, 32], strides = [1, 1]} : vector<14x384xbf16> to vector<14x32xbf16>
    %93 = vector.extract_strided_slice %39 {offsets = [0, 352], sizes = [14, 32], strides = [1, 1]} : vector<14x384xbf16> to vector<14x32xbf16>
    %cst_33 = arith.constant dense<0.000000e+00> : vector<14x14xf32>
    %94 = tpu.matmul %91, %92, %cst_33 {dimension_numbers = #tpu.dot_dimension_numbers<[1], [1], [0], [0], [0, 0, 1, 0], [], []>} : vector<14x32xbf16>, vector<14x32xbf16>, vector<14x14xf32> -> vector<14x14xf32>
    %95 = arith.addf %94, %4 : vector<14x14xf32>
    %cst_34 = arith.constant dense<0xFF800000> : vector<14xf32>
    %96 = vector.multi_reduction <maximumf>, %95, %cst_34 [1] : vector<14x14xf32> to vector<14xf32>
    %97 = vector.shape_cast %96 : vector<14xf32> to vector<14x1xf32>
    %98 = vector.broadcast %97 : vector<14x1xf32> to vector<14x14xf32>
    %99 = arith.subf %95, %98 : vector<14x14xf32>
    %100 = math.exp %99 : vector<14x14xf32>
    %cst_35 = arith.constant dense<0.000000e+00> : vector<14xf32>
    %101 = vector.multi_reduction <add>, %100, %cst_35 [1] : vector<14x14xf32> to vector<14xf32>
    %102 = vector.shape_cast %101 : vector<14xf32> to vector<14x1xf32>
    %103 = tpu.reciprocal %102 {approx = true} : vector<14x1xf32> -> vector<14x1xf32>
    %104 = vector.broadcast %103 : vector<14x1xf32> to vector<14x14xf32>
    %105 = arith.mulf %100, %104 : vector<14x14xf32>
    %106 = arith.truncf %105 : vector<14x14xf32> to vector<14x14xbf16>
    %cst_36 = arith.constant dense<0.000000e+00> : vector<14x32xf32>
    %107 = tpu.matmul %106, %93, %cst_36 {dimension_numbers = #tpu.dot_dimension_numbers<[1], [0], [0], [1], [0, 0, 1, 1], [], []>} : vector<14x14xbf16>, vector<14x32xbf16>, vector<14x32xf32> -> vector<14x32xf32>
    %108 = tpu.concatenate %56, %73, %90, %107 in 1 : vector<14x32xf32>, vector<14x32xf32>, vector<14x32xf32>, vector<14x32xf32> -> vector<14x128xf32>
    %109 = arith.truncf %108 : vector<14x128xf32> to vector<14x128xbf16>
    %c0_37 = arith.constant 0 : index
    %c0_38 = arith.constant 0 : index
    %c0_39 = arith.constant 0 : index
    %110 = vector.load %arg7[%c0_37, %c0_38, %c0_39] : memref<1x128x128xbf16, #tpu.memory_space<vmem>>, vector<1x128x128xbf16>
    %111 = vector.shape_cast %110 : vector<1x128x128xbf16> to vector<128x128xbf16>
    %cst_40 = arith.constant dense<0.000000e+00> : vector<14x128xf32>
    %112 = tpu.matmul %109, %111, %cst_40 {dimension_numbers = #tpu.dot_dimension_numbers<[1], [0], [0], [1], [0, 0, 1, 1], [], []>} : vector<14x128xbf16>, vector<128x128xbf16>, vector<14x128xf32> -> vector<14x128xf32>
    %113 = arith.addf %3, %112 : vector<14x128xf32>
    %c0_41 = arith.constant 0 : index
    %c0_42 = arith.constant 0 : index
    %c0_43 = arith.constant 0 : index
    %114 = vector.load %arg8[%c0_41, %c0_42, %c0_43] : memref<1x1x128xf32, #tpu.memory_space<vmem>>, vector<1x1x128xf32>
    %115 = vector.shape_cast %114 : vector<1x1x128xf32> to vector<1x128xf32>
    %116 = vector.broadcast %115 : vector<1x128xf32> to vector<14x128xf32>
    %117 = arith.addf %113, %116 : vector<14x128xf32>
    %c0_44 = arith.constant 0 : index
    %c0_45 = arith.constant 0 : index
    %c0_46 = arith.constant 0 : index
    %118 = vector.load %arg9[%c0_44, %c0_45, %c0_46] : memref<1x1x128xf32, #tpu.memory_space<vmem>>, vector<1x1x128xf32>
    %119 = vector.shape_cast %118 : vector<1x1x128xf32> to vector<1x128xf32>
    %c0_47 = arith.constant 0 : index
    %c0_48 = arith.constant 0 : index
    %c0_49 = arith.constant 0 : index
    %120 = vector.load %arg10[%c0_47, %c0_48, %c0_49] : memref<1x1x128xf32, #tpu.memory_space<vmem>>, vector<1x1x128xf32>
    %121 = vector.shape_cast %120 : vector<1x1x128xf32> to vector<1x128xf32>
    %cst_50 = arith.constant dense<0.000000e+00> : vector<14xf32>
    %122 = vector.multi_reduction <add>, %117, %cst_50 [1] : vector<14x128xf32> to vector<14xf32>
    %123 = vector.shape_cast %122 : vector<14xf32> to vector<14x1xf32>
    %cst_51 = arith.constant 1.280000e+02 : f32
    %124 = vector.broadcast %cst_51 : f32 to vector<14x1xf32>
    %125 = arith.divf %123, %124 : vector<14x1xf32>
    %126 = vector.broadcast %125 : vector<14x1xf32> to vector<14x128xf32>
    %127 = arith.subf %117, %126 : vector<14x128xf32>
    %128 = arith.mulf %127, %127 : vector<14x128xf32>
    %cst_52 = arith.constant dense<0.000000e+00> : vector<14xf32>
    %129 = vector.multi_reduction <add>, %128, %cst_52 [1] : vector<14x128xf32> to vector<14xf32>
    %130 = vector.shape_cast %129 : vector<14xf32> to vector<14x1xf32>
    %cst_53 = arith.constant 1.280000e+02 : f32
    %131 = vector.broadcast %cst_53 : f32 to vector<14x1xf32>
    %132 = arith.divf %130, %131 : vector<14x1xf32>
    %133 = vector.broadcast %125 : vector<14x1xf32> to vector<14x128xf32>
    %134 = arith.subf %117, %133 : vector<14x128xf32>
    %cst_54 = arith.constant 9.99999997E-7 : f32
    %135 = vector.broadcast %cst_54 : f32 to vector<14x1xf32>
    %136 = arith.addf %132, %135 : vector<14x1xf32>
    %137 = math.rsqrt %136 : vector<14x1xf32>
    %138 = vector.broadcast %137 : vector<14x1xf32> to vector<14x128xf32>
    %139 = arith.mulf %134, %138 : vector<14x128xf32>
    %140 = vector.broadcast %119 : vector<1x128xf32> to vector<14x128xf32>
    %141 = arith.mulf %139, %140 : vector<14x128xf32>
    %142 = vector.broadcast %121 : vector<1x128xf32> to vector<14x128xf32>
    %143 = arith.addf %141, %142 : vector<14x128xf32>
    %144 = arith.truncf %143 : vector<14x128xf32> to vector<14x128xbf16>
    %c0_55 = arith.constant 0 : index
    %c0_56 = arith.constant 0 : index
    %c0_57 = arith.constant 0 : index
    %145 = vector.load %arg11[%c0_55, %c0_56, %c0_57] : memref<1x128x512xbf16, #tpu.memory_space<vmem>>, vector<1x128x512xbf16>
    %146 = vector.shape_cast %145 : vector<1x128x512xbf16> to vector<128x512xbf16>
    %cst_58 = arith.constant dense<0.000000e+00> : vector<14x512xf32>
    %147 = tpu.matmul %144, %146, %cst_58 {dimension_numbers = #tpu.dot_dimension_numbers<[1], [0], [0], [1], [0, 0, 1, 1], [], []>} : vector<14x128xbf16>, vector<128x512xbf16>, vector<14x512xf32> -> vector<14x512xf32>
    %c0_59 = arith.constant 0 : index
    %c0_60 = arith.constant 0 : index
    %c0_61 = arith.constant 0 : index
    %148 = vector.load %arg12[%c0_59, %c0_60, %c0_61] : memref<1x1x512xf32, #tpu.memory_space<vmem>>, vector<1x1x512xf32>
    %149 = vector.shape_cast %148 : vector<1x1x512xf32> to vector<1x512xf32>
    %150 = vector.broadcast %149 : vector<1x512xf32> to vector<14x512xf32>
    %151 = arith.addf %147, %150 : vector<14x512xf32>
    %cst_62 = arith.constant 5.000000e-01 : f32
    %152 = vector.broadcast %cst_62 : f32 to vector<14x512xf32>
    %153 = arith.mulf %152, %151 : vector<14x512xf32>
    %cst_63 = arith.constant 4.471500e-02 : f32
    %154 = vector.broadcast %cst_63 : f32 to vector<14x512xf32>
    %155 = arith.mulf %154, %151 : vector<14x512xf32>
    %156 = arith.mulf %155, %151 : vector<14x512xf32>
    %157 = arith.mulf %156, %151 : vector<14x512xf32>
    %158 = arith.addf %151, %157 : vector<14x512xf32>
    %cst_64 = arith.constant 0.797884583 : f32
    %159 = vector.broadcast %cst_64 : f32 to vector<14x512xf32>
    %160 = arith.mulf %159, %158 : vector<14x512xf32>
    %161 = math.tanh %160 : vector<14x512xf32>
    %cst_65 = arith.constant 1.000000e+00 : f32
    %162 = vector.broadcast %cst_65 : f32 to vector<14x512xf32>
    %163 = arith.addf %162, %161 : vector<14x512xf32>
    %164 = arith.mulf %153, %163 : vector<14x512xf32>
    %165 = arith.truncf %164 : vector<14x512xf32> to vector<14x512xbf16>
    %c0_66 = arith.constant 0 : index
    %c0_67 = arith.constant 0 : index
    %c0_68 = arith.constant 0 : index
    %166 = vector.load %arg13[%c0_66, %c0_67, %c0_68] : memref<1x512x128xbf16, #tpu.memory_space<vmem>>, vector<1x512x128xbf16>
    %167 = vector.shape_cast %166 : vector<1x512x128xbf16> to vector<512x128xbf16>
    %cst_69 = arith.constant dense<0.000000e+00> : vector<14x128xf32>
    %168 = tpu.matmul %165, %167, %cst_69 {dimension_numbers = #tpu.dot_dimension_numbers<[1], [0], [0], [1], [0, 0, 1, 1], [], []>} : vector<14x512xbf16>, vector<512x128xbf16>, vector<14x128xf32> -> vector<14x128xf32>
    %169 = arith.addf %117, %168 : vector<14x128xf32>
    %c0_70 = arith.constant 0 : index
    %c0_71 = arith.constant 0 : index
    %c0_72 = arith.constant 0 : index
    %170 = vector.load %arg14[%c0_70, %c0_71, %c0_72] : memref<1x1x128xf32, #tpu.memory_space<vmem>>, vector<1x1x128xf32>
    %171 = vector.shape_cast %170 : vector<1x1x128xf32> to vector<1x128xf32>
    %172 = vector.broadcast %171 : vector<1x128xf32> to vector<14x128xf32>
    %173 = arith.addf %169, %172 : vector<14x128xf32>
    %c11_i32 = arith.constant 11 : i32
    %174 = arith.cmpi eq, %arg0, %c11_i32 : i32
    %175 = arith.extui %174 : i1 to i32
    %c0_i32_73 = arith.constant 0 : i32
    %176 = arith.cmpi ne, %175, %c0_i32_73 : i32
    scf.if %176 {
      %c0_76 = arith.constant 0 : index
      %c0_77 = arith.constant 0 : index
      %c0_78 = arith.constant 0 : index
      %180 = vector.load %arg15[%c0_76, %c0_77, %c0_78] : memref<1x1x128xf32, #tpu.memory_space<vmem>>, vector<1x1x128xf32>
      %181 = vector.shape_cast %180 : vector<1x1x128xf32> to vector<1x128xf32>
      %c0_79 = arith.constant 0 : index
      %c0_80 = arith.constant 0 : index
      %c0_81 = arith.constant 0 : index
      %182 = vector.load %arg16[%c0_79, %c0_80, %c0_81] : memref<1x1x128xf32, #tpu.memory_space<vmem>>, vector<1x1x128xf32>
      %183 = vector.shape_cast %182 : vector<1x1x128xf32> to vector<1x128xf32>
      %cst_82 = arith.constant dense<0.000000e+00> : vector<14xf32>
      %184 = vector.multi_reduction <add>, %173, %cst_82 [1] : vector<14x128xf32> to vector<14xf32>
      %185 = vector.shape_cast %184 : vector<14xf32> to vector<14x1xf32>
      %cst_83 = arith.constant 1.280000e+02 : f32
      %186 = vector.broadcast %cst_83 : f32 to vector<14x1xf32>
      %187 = arith.divf %185, %186 : vector<14x1xf32>
      %188 = vector.broadcast %187 : vector<14x1xf32> to vector<14x128xf32>
      %189 = arith.subf %173, %188 : vector<14x128xf32>
      %190 = arith.mulf %189, %189 : vector<14x128xf32>
      %cst_84 = arith.constant dense<0.000000e+00> : vector<14xf32>
      %191 = vector.multi_reduction <add>, %190, %cst_84 [1] : vector<14x128xf32> to vector<14xf32>
      %192 = vector.shape_cast %191 : vector<14xf32> to vector<14x1xf32>
      %cst_85 = arith.constant 1.280000e+02 : f32
      %193 = vector.broadcast %cst_85 : f32 to vector<14x1xf32>
      %194 = arith.divf %192, %193 : vector<14x1xf32>
      %195 = vector.broadcast %187 : vector<14x1xf32> to vector<14x128xf32>
      %196 = arith.subf %173, %195 : vector<14x128xf32>
      %cst_86 = arith.constant 9.99999997E-7 : f32
      %197 = vector.broadcast %cst_86 : f32 to vector<14x1xf32>
      %198 = arith.addf %194, %197 : vector<14x1xf32>
      %199 = math.rsqrt %198 : vector<14x1xf32>
      %200 = vector.broadcast %199 : vector<14x1xf32> to vector<14x128xf32>
      %201 = arith.mulf %196, %200 : vector<14x128xf32>
      %202 = vector.broadcast %181 : vector<1x128xf32> to vector<14x128xf32>
      %203 = arith.mulf %201, %202 : vector<14x128xf32>
      %204 = vector.broadcast %183 : vector<1x128xf32> to vector<14x128xf32>
      %205 = arith.addf %203, %204 : vector<14x128xf32>
      %c0_87 = arith.constant 0 : index
      %c0_88 = arith.constant 0 : index
      %206 = vector.load %arg17[%c0_87, %c0_88] : memref<14x128xf32, #tpu.memory_space<vmem>>, vector<14x128xf32>
      tpu.vector_store %arg17[%c0_87, %c0_88], %205 {strides = array<i32>} : memref<14x128xf32, #tpu.memory_space<vmem>>, vector<14x128xf32>,
    } else {
    }
    %c11_i32_74 = arith.constant 11 : i32
    %177 = arith.cmpi slt, %arg0, %c11_i32_74 : i32
    %178 = arith.extui %177 : i1 to i32
    %c0_i32_75 = arith.constant 0 : i32
    %179 = arith.cmpi ne, %178, %c0_i32_75 : i32
    scf.if %179 {
      %c0_76 = arith.constant 0 : index
      %c0_77 = arith.constant 0 : index
      %180 = vector.load %arg18[%c0_76, %c0_77] : memref<14x128xf32, #tpu.memory_space<vmem>>, vector<14x128xf32>
      tpu.vector_store %arg18[%c0_76, %c0_77], %173 {strides = array<i32>} : memref<14x128xf32, #tpu.memory_space<vmem>>, vector<14x128xf32>,
    } else {
    }
    return
  }
  func.func @transform_0(%arg0: i32) -> (i32, i32) {
    %c0_i32 = arith.constant 0 : i32
    %c0_i32_0 = arith.constant 0 : i32
    %c0_i32_1 = arith.constant 0 : i32
    return %c0_i32, %c0_i32_0 : i32, i32
  }
  func.func @transform_1(%arg0: i32) -> (i32, i32) {
    %c0_i32 = arith.constant 0 : i32
    %c0_i32_0 = arith.constant 0 : i32
    %c0_i32_1 = arith.constant 0 : i32
    return %c0_i32, %c0_i32_0 : i32, i32
  }
  func.func @transform_2(%arg0: i32) -> (i32, i32, i32) {
    %c0_i32 = arith.constant 0 : i32
    %c0_i32_0 = arith.constant 0 : i32
    %c0_i32_1 = arith.constant 0 : i32
    return %arg0, %c0_i32, %c0_i32_0 : i32, i32, i32
  }
  func.func @transform_3(%arg0: i32) -> (i32, i32, i32) {
    %c0_i32 = arith.constant 0 : i32
    %c0_i32_0 = arith.constant 0 : i32
    %c0_i32_1 = arith.constant 0 : i32
    return %arg0, %c0_i32, %c0_i32_0 : i32, i32, i32
  }
  func.func @transform_4(%arg0: i32) -> (i32, i32, i32) {
    %c0_i32 = arith.constant 0 : i32
    %c0_i32_0 = arith.constant 0 : i32
    %c0_i32_1 = arith.constant 0 : i32
    return %arg0, %c0_i32, %c0_i32_0 : i32, i32, i32
  }
  func.func @transform_5(%arg0: i32) -> (i32, i32, i32) {
    %c0_i32 = arith.constant 0 : i32
    %c0_i32_0 = arith.constant 0 : i32
    %c0_i32_1 = arith.constant 0 : i32
    return %arg0, %c0_i32, %c0_i32_0 : i32, i32, i32
  }
  func.func @transform_6(%arg0: i32) -> (i32, i32, i32) {
    %c0_i32 = arith.constant 0 : i32
    %c0_i32_0 = arith.constant 0 : i32
    %c0_i32_1 = arith.constant 0 : i32
    return %arg0, %c0_i32, %c0_i32_0 : i32, i32, i32
  }
  func.func @transform_7(%arg0: i32) -> (i32, i32, i32) {
    %c0_i32 = arith.constant 0 : i32
    %c0_i32_0 = arith.constant 0 : i32
    %c0_i32_1 = arith.constant 0 : i32
    return %arg0, %c0_i32, %c0_i32_0 : i32, i32, i32
  }
  func.func @transform_8(%arg0: i32) -> (i32, i32, i32) {
    %c0_i32 = arith.constant 0 : i32
    %c0_i32_0 = arith.constant 0 : i32
    %c0_i32_1 = arith.constant 0 : i32
    return %arg0, %c0_i32, %c0_i32_0 : i32, i32, i32
  }
  func.func @transform_9(%arg0: i32) -> (i32, i32, i32) {
    %c0_i32 = arith.constant 0 : i32
    %c0_i32_0 = arith.constant 0 : i32
    %c0_i32_1 = arith.constant 0 : i32
    return %arg0, %c0_i32, %c0_i32_0 : i32, i32, i32
  }
  func.func @transform_10(%arg0: i32) -> (i32, i32, i32) {
    %c0_i32 = arith.constant 0 : i32
    %c0_i32_0 = arith.constant 0 : i32
    %c0_i32_1 = arith.constant 0 : i32
    return %arg0, %c0_i32, %c0_i32_0 : i32, i32, i32
  }
  func.func @transform_11(%arg0: i32) -> (i32, i32, i32) {
    %c0_i32 = arith.constant 0 : i32
    %c0_i32_0 = arith.constant 0 : i32
    %c0_i32_1 = arith.constant 0 : i32
    return %arg0, %c0_i32, %c0_i32_0 : i32, i32, i32
  }
  func.func @transform_12(%arg0: i32) -> (i32, i32, i32) {
    %c0_i32 = arith.constant 0 : i32
    %c0_i32_0 = arith.constant 0 : i32
    %c0_i32_1 = arith.constant 0 : i32
    return %arg0, %c0_i32, %c0_i32_0 : i32, i32, i32
  }
  func.func @transform_13(%arg0: i32) -> (i32, i32, i32) {
    %c0_i32 = arith.constant 0 : i32
    %c0_i32_0 = arith.constant 0 : i32
    %c0_i32_1 = arith.constant 0 : i32
    return %arg0, %c0_i32, %c0_i32_0 : i32, i32, i32
  }
  func.func @transform_14(%arg0: i32) -> (i32, i32, i32) {
    %c0_i32 = arith.constant 0 : i32
    %c0_i32_0 = arith.constant 0 : i32
    %c0_i32_1 = arith.constant 0 : i32
    %c0_i32_2 = arith.constant 0 : i32
    return %c0_i32, %c0_i32_0, %c0_i32_1 : i32, i32, i32
  }
  func.func @transform_15(%arg0: i32) -> (i32, i32, i32) {
    %c0_i32 = arith.constant 0 : i32
    %c0_i32_0 = arith.constant 0 : i32
    %c0_i32_1 = arith.constant 0 : i32
    %c0_i32_2 = arith.constant 0 : i32
    return %c0_i32, %c0_i32_0, %c0_i32_1 : i32, i32, i32
  }
  func.func @transform_16(%arg0: i32) -> (i32, i32) {
    %c0_i32 = arith.constant 0 : i32
    %c0_i32_0 = arith.constant 0 : i32
    %c0_i32_1 = arith.constant 0 : i32
    return %c0_i32, %c0_i32_0 : i32, i32
  }
}

</mosaic_0001>

<bundles_post_ra>
// kernel: forward.3
= control target key start
LH: loop header
LB: loop body
LE: loop exit
PB: predicated region body
PF: predicated region fallthrough
CT: control target
= control target key end

     0   :  { %vm1193_vm0 = vcmask 193536   ;;  %s2151_s1 = inlined_call_operand.vmem [shape: bf16[256,1176], index: 1, kind: input, shape index: {}]   ;;  %s2152_s0 = inlined_call_operand.vmem [shape: bf16[6,256], index: 0, kind: input, shape index: {}]   ;;  %s2153_s2 = inlined_call_operand.vmem [shape: f32[6,1176], index: 2, kind: output, shape index: {}]  }
   0x1   :  { %v1361_v0 = vld [vmem:[%s2151_s1 + $0x234] ss:$40 sps:$4 sm:$0xff]   ;;  %v1363_v1 = vld [vmem:[%s2151_s1 + $0x230] ss:$40 sps:$4 sm:$0xff]   ;;  %v1364_v2 = vld [vmem:[%s2151_s1 + $0x1e4] ss:$40 sps:$4 sm:$0xff]  }
   0x2   :  { %979 = vmatprep.subr.bf16.mxu0 %v1361_v0  ;;  %v1366_v3 = vld [vmem:[%s2151_s1 + $0x1e0] ss:$40 sps:$4 sm:$0xff]   ;;  %v1367_v4 = vld [vmem:[%s2151_s1 + $0x194] ss:$40 sps:$4 sm:$0xff]   ;;  %v1369_v5 = vld [vmem:[%s2151_s1 + $0x190] ss:$40 sps:$4 sm:$0xff]  }
   0x3   :  { %980 = vmatpush1.bf16.msra.mxu0 %v1363_v1  ;;  %v1370_v6 = vld [vmem:[%s2151_s1 + $0x144] ss:$40 sps:$4 sm:$0xff]   ;;  %v1372_v7 = vld [vmem:[%s2151_s1 + $0x140] ss:$40 sps:$4 sm:$0xff]   ;;  %v1373_v8 = vld [vmem:[%s2151_s1 + $0xf4] ss:$40 sps:$4 sm:$0xff]  }
   0x4   :  { %981 = vmatprep.subr.bf16.mxu0 %v1364_v2  ;;  %v1375_v9 = vld [vmem:[%s2151_s1 + $0xf0] ss:$40 sps:$4 sm:$0xff]   ;;  %v1376_v10 = vld [vmem:[%s2151_s1 + $0xa4] ss:$40 sps:$4 sm:$0xff]   ;;  %v1378_v11 = vld [vmem:[%s2151_s1 + $0xa0] ss:$40 sps:$4 sm:$0xff]  }
   0x5   :  { %v1379_v12 = vld [vmem:[%s2151_s1 + $0x54] ss:$40 sps:$4 sm:$0xff]   ;;  %v1408_v14 = vld [vmem:[%s2151_s1 + $0x238] ss:$40 sps:$4 sm:$0xff]   ;;  %v1382_v16 = vld [vmem:[%s2151_s1 + $0x4] ss:$40 sps:$4 sm:$0xff]  }
   0x6   :  { %v1406_v13 = vld [vmem:[%s2151_s1 + $0x23c] ss:$40 sps:$4 sm:$0xff]   ;;  %v1381_v15 = vld [vmem:[%s2151_s1 + $0x50] ss:$40 sps:$4 sm:$0xff]   ;;  %v1412_v17 = vld [vmem:[%s2151_s1 + $0x1ec] ss:$40 sps:$4 sm:$0xff]  }
   0x7   :  { %982 = vmatpush1.bf16.msra.mxu0 %v1366_v3  ;;  %1020 = vmatprep.subr.bf16.mxu1 %v1406_v13  ;;  %v1675_v18 = vld [vmem:[%s2152_s0] sm:$0x77]  ;;  %v1415_v20 = vld [vmem:[%s2151_s1 + $0x1e8] ss:$40 sps:$4 sm:$0xff]   ;;  %v1385_v24 = vld [vmem:[%s2151_s1 + $0x4b4] ss:$40 sps:$4 sm:$0xff]  }
   0x8   :  { %983 = vmatprep.subr.bf16.mxu0 %v1367_v4  ;;  %1021 = vmatpush1.bf16.msra.mxu1 %v1408_v14  ;;  %v1679_v19 = vcombine.high %v1675_v18, %v1675_v18  ;;  %v1384_v21 = vld [vmem:[%s2151_s1] ss:$40 sps:$4 sm:$0xff]   ;;  %v1420_v22 = vld [vmem:[%s2151_s1 + $0x19c] ss:$40 sps:$4 sm:$0xff]   ;;  %v1426_v25 = vld [vmem:[%s2151_s1 + $0x14c] ss:$40 sps:$4 sm:$0xff]   ;;  %v1799_v58 = vcombine.low %v1675_v18, %v1675_v18 }
   0x9   :  { %1022 = vmatprep.subr.bf16.mxu1 %v1412_v17  ;;  %v1422_v23 = vld [vmem:[%s2151_s1 + $0x198] ss:$40 sps:$4 sm:$0xff]   ;;  %v1388_v27 = vld [vmem:[%s2151_s1 + $0x464] ss:$40 sps:$4 sm:$0xff]   ;;  %v1428_v28 = vld [vmem:[%s2151_s1 + $0x148] ss:$40 sps:$4 sm:$0xff]  }
   0xa   :  { %1011 = vmatprep.mubr.bf16.mxu0 %v1679_v19  ;;  %1052 = vmatprep.mubr.bf16.mxu1 %v1679_v19  ;;  %v1387_v26 = vld [vmem:[%s2151_s1 + $0x4b0] ss:$40 sps:$4 sm:$0xff]   ;;  %v1432_v29 = vld [vmem:[%s2151_s1 + $0xfc] ss:$40 sps:$4 sm:$0xff]   ;;  %v1390_v30 = vld [vmem:[%s2151_s1 + $0x460] ss:$40 sps:$4 sm:$0xff]  }
   0xb   :  { %984 = vmatpush1.bf16.msra.mxu0 %v1369_v5  ;;  %v1391_v31 = vld [vmem:[%s2151_s1 + $0x414] ss:$40 sps:$4 sm:$0xff]   ;;  %v1434_v32 = vld [vmem:[%s2151_s1 + $0xf8] ss:$40 sps:$4 sm:$0xff]   ;;  %v1394_v35 = vld [vmem:[%s2151_s1 + $0x3c4] ss:$40 sps:$4 sm:$0xff]  }
   0xc   :  { %985 = vmatprep.subr.bf16.mxu0 %v1370_v6  ;;  %1023 = vmatpush1.bf16.msra.mxu1 %v1415_v20  ;;  %v1438_v33 = vld [vmem:[%s2151_s1 + $0xac] ss:$40 sps:$4 sm:$0xff]   ;;  %v1393_v34 = vld [vmem:[%s2151_s1 + $0x410] ss:$40 sps:$4 sm:$0xff]   ;;  %v1444_v37 = vld [vmem:[%s2151_s1 + $0x5c] ss:$40 sps:$4 sm:$0xff]  }
   0xd   :  { %1024 = vmatprep.subr.bf16.mxu1 %v1420_v22  ;;  %v1440_v36 = vld [vmem:[%s2151_s1 + $0xa8] ss:$40 sps:$4 sm:$0xff]   ;;  %v1397_v39 = vld [vmem:[%s2151_s1 + $0x374] ss:$40 sps:$4 sm:$0xff]   ;;  %v1446_v40 = vld [vmem:[%s2151_s1 + $0x58] ss:$40 sps:$4 sm:$0xff]  }
   0xe   :  { %v1396_v38 = vld [vmem:[%s2151_s1 + $0x3c0] ss:$40 sps:$4 sm:$0xff]   ;;  %v1450_v41 = vld [vmem:[%s2151_s1 + $0xc] ss:$40 sps:$4 sm:$0xff]   ;;  %v1399_v42 = vld [vmem:[%s2151_s1 + $0x370] ss:$40 sps:$4 sm:$0xff]  }
   0xf   :  { %986 = vmatpush1.bf16.msra.mxu0 %v1372_v7  ;;  %v1400_v43 = vld [vmem:[%s2151_s1 + $0x324] ss:$40 sps:$4 sm:$0xff]   ;;  %v1452_v44 = vld [vmem:[%s2151_s1 + $0x8] ss:$40 sps:$4 sm:$0xff]   ;;  %v1403_v47 = vld [vmem:[%s2151_s1 + $0x2d4] ss:$40 sps:$4 sm:$0xff]  }
  0x10   :  { %987 = vmatprep.subr.bf16.mxu0 %v1373_v8  ;;  %1025 = vmatpush1.bf16.msra.mxu1 %v1422_v23  ;;  %v1456_v45 = vld [vmem:[%s2151_s1 + $0x4bc] ss:$40 sps:$4 sm:$0xff]   ;;  %v1402_v46 = vld [vmem:[%s2151_s1 + $0x320] ss:$40 sps:$4 sm:$0xff]   ;;  %v1462_v49 = vld [vmem:[%s2151_s1 + $0x46c] ss:$40 sps:$4 sm:$0xff]  }
  0x11   :  { %1026 = vmatprep.subr.bf16.mxu1 %v1426_v25  ;;  %v1458_v48 = vld [vmem:[%s2151_s1 + $0x4b8] ss:$40 sps:$4 sm:$0xff]   ;;  %v1409_v51 = vld [vmem:[%s2151_s1 + $0x284] ss:$40 sps:$4 sm:$0xff]   ;;  %v1464_v52 = vld [vmem:[%s2151_s1 + $0x468] ss:$40 sps:$4 sm:$0xff]  }
  0x12   :  { %v1405_v50 = vld [vmem:[%s2151_s1 + $0x2d0] ss:$40 sps:$4 sm:$0xff]   ;;  %v1468_v53 = vld [vmem:[%s2151_s1 + $0x41c] ss:$40 sps:$4 sm:$0xff]   ;;  %v1411_v54 = vld [vmem:[%s2151_s1 + $0x280] ss:$40 sps:$4 sm:$0xff]  }
  0x13   :  { %988 = vmatpush1.bf16.msra.mxu0 %v1375_v9  ;;  %v1419_v55 = vld [vmem:[%s2151_s1 + $0x244] ss:$40 sps:$4 sm:$0xff]   ;;  %v1470_v56 = vld [vmem:[%s2151_s1 + $0x418] ss:$40 sps:$4 sm:$0xff]   ;;  %v1425_v60 = vld [vmem:[%s2151_s1 + $0x1f4] ss:$40 sps:$4 sm:$0xff]  }
  0x14   :  { %989 = vmatprep.subr.bf16.mxu0 %v1376_v10  ;;  %1027 = vmatpush1.bf16.msra.mxu1 %v1428_v28  ;;  %v1474_v57 = vld [vmem:[%s2151_s1 + $0x3cc] ss:$40 sps:$4 sm:$0xff]   ;;  %v1417_v59 = vld [vmem:[%s2151_s1 + $0x240] ss:$40 sps:$4 sm:$0xff]   ;;  %v1480_v62 = vld [vmem:[%s2151_s1 + $0x37c] ss:$40 sps:$4 sm:$0xff]  }
  0x15   :  { %1028 = vmatprep.subr.bf16.mxu1 %v1432_v29  ;;  %v1476_v61 = vld [vmem:[%s2151_s1 + $0x3c8] ss:$40 sps:$4 sm:$0xff]   ;;  %v1431_v0 = vld [vmem:[%s2151_s1 + $0x1a4] ss:$40 sps:$4 sm:$0xff]   ;;  %v1482_v1 = vld [vmem:[%s2151_s1 + $0x378] ss:$40 sps:$4 sm:$0xff]  }
  0x16   :  { %v1423_v63 = vld [vmem:[%s2151_s1 + $0x1f0] ss:$40 sps:$4 sm:$0xff]   ;;  %v1486_v2 = vld [vmem:[%s2151_s1 + $0x32c] ss:$40 sps:$4 sm:$0xff]   ;;  %v1429_v3 = vld [vmem:[%s2151_s1 + $0x1a0] ss:$40 sps:$4 sm:$0xff]  }
  0x17   :  { %990 = vmatpush1.bf16.msra.mxu0 %v1378_v11  ;;  %v1437_v4 = vld [vmem:[%s2151_s1 + $0x154] ss:$40 sps:$4 sm:$0xff]   ;;  %v1488_v5 = vld [vmem:[%s2151_s1 + $0x328] ss:$40 sps:$4 sm:$0xff]   ;;  %v1443_v8 = vld [vmem:[%s2151_s1 + $0x104] ss:$40 sps:$4 sm:$0xff]  }
  0x18   :  { %991 = vmatprep.subr.bf16.mxu0 %v1379_v12  ;;  %1029 = vmatpush1.bf16.msra.mxu1 %v1434_v32  ;;  %v1492_v6 = vld [vmem:[%s2151_s1 + $0x2dc] ss:$40 sps:$4 sm:$0xff]   ;;  %v1435_v7 = vld [vmem:[%s2151_s1 + $0x150] ss:$40 sps:$4 sm:$0xff]   ;;  %v1498_v10 = vld [vmem:[%s2151_s1 + $0x28c] ss:$40 sps:$4 sm:$0xff]  }
  0x19   :  { %1030 = vmatprep.subr.bf16.mxu1 %v1438_v33  ;;  %v1494_v9 = vld [vmem:[%s2151_s1 + $0x2d8] ss:$40 sps:$4 sm:$0xff]   ;;  %v1449_v12 = vld [vmem:[%s2151_s1 + $0xb4] ss:$40 sps:$4 sm:$0xff]   ;;  %v1500_v13 = vld [vmem:[%s2151_s1 + $0x288] ss:$40 sps:$4 sm:$0xff]  }
  0x1a   :  { %v1441_v11 = vld [vmem:[%s2151_s1 + $0x100] ss:$40 sps:$4 sm:$0xff]   ;;  %v1506_v14 = vld [vmem:[%s2151_s1 + $0x24c] ss:$40 sps:$4 sm:$0xff]   ;;  %v1512_v18 = vld [vmem:[%s2151_s1 + $0x1fc] ss:$40 sps:$4 sm:$0xff]  }
  0x1b   :  { %992 = vmatpush1.bf16.msra.mxu0 %v1381_v15  ;;  %v1447_v15 = vld [vmem:[%s2151_s1 + $0xb0] ss:$40 sps:$4 sm:$0xff]   ;;  %v1453_v20 = vld [vmem:[%s2151_s1 + $0x60] ss:$40 sps:$4 sm:$0xff]   ;;  %v1518_v23 = vld [vmem:[%s2151_s1 + $0x1ac] ss:$40 sps:$4 sm:$0xff]  }
  0x1c   :  { %993 = vmatprep.subr.bf16.mxu0 %v1382_v16  ;;  %1031 = vmatpush1.bf16.msra.mxu1 %v1440_v36  ;;  %v1455_v16 = vld [vmem:[%s2151_s1 + $0x64] ss:$40 sps:$4 sm:$0xff]   ;;  %v1504_v17 = vld [vmem:[%s2151_s1 + $0x248] ss:$40 sps:$4 sm:$0xff]   ;;  %v1510_v22 = vld [vmem:[%s2151_s1 + $0x1f8] ss:$40 sps:$4 sm:$0xff]  }
  0x1d   :  { %1032 = vmatprep.subr.bf16.mxu1 %v1444_v37  ;;  %v1467_v25 = vld [vmem:[%s2151_s1 + $0x4c4] ss:$40 sps:$4 sm:$0xff]   ;;  %v1465_v28 = vld [vmem:[%s2151_s1 + $0x4c0] ss:$40 sps:$4 sm:$0xff]   ;;  %v1473_v29 = vld [vmem:[%s2151_s1 + $0x474] ss:$40 sps:$4 sm:$0xff]  }
  0x1e   :  { %v1471_v32 = vld [vmem:[%s2151_s1 + $0x470] ss:$40 sps:$4 sm:$0xff]   ;;  %v1479_v33 = vld [vmem:[%s2151_s1 + $0x424] ss:$40 sps:$4 sm:$0xff]   ;;  %v1477_v36 = vld [vmem:[%s2151_s1 + $0x420] ss:$40 sps:$4 sm:$0xff]  }
  0x1f   :  { %994 = vmatpush1.bf16.msra.mxu0 %v1384_v21  ;;  %v1461_v21 = vld [vmem:[%s2151_s1 + $0x14] ss:$40 sps:$4 sm:$0xff]  }
  0x20   :  { %995 = vmatprep.subr.bf16.mxu0 %v1385_v24  ;;  %1033 = vmatpush1.bf16.msra.mxu1 %v1446_v40  ;;  %v1459_v24 = vld [vmem:[%s2151_s1 + $0x10] ss:$40 sps:$4 sm:$0xff]   ;;  %v1485_v37 = vld [vmem:[%s2151_s1 + $0x3d4] ss:$40 sps:$4 sm:$0xff]  }
  0x21   :  { %1034 = vmatprep.subr.bf16.mxu1 %v1450_v41  ;;  %v1483_v40 = vld [vmem:[%s2151_s1 + $0x3d0] ss:$40 sps:$4 sm:$0xff]  }
  0x22   :  { %v1540_v41 = vld [vmem:[%s2151_s1 + $0x68] ss:$40 sps:$4 sm:$0xff]  }
  0x23   :  { %996 = vmatpush2.bf16.msra.mxu0 %v1387_v26  ;;  %v1516_v26 = vld [vmem:[%s2151_s1 + $0x1a8] ss:$40 sps:$4 sm:$0xff]  }
  0x24   :  { %997 = vmatprep.subr.bf16.mxu0 %v1388_v27  ;;  %1035 = vmatpush1.bf16.msra.mxu1 %v1452_v44  ;;  %v1524_v27 = vld [vmem:[%s2151_s1 + $0x15c] ss:$40 sps:$4 sm:$0xff]   ;;  %v1489_v44 = vld [vmem:[%s2151_s1 + $0x380] ss:$40 sps:$4 sm:$0xff]  }
  0x25   :  { %1036 = vmatprep.subr.bf16.mxu1 %v1456_v45  ;;  %v1546_v45 = vld [vmem:[%s2151_s1 + $0x18] ss:$40 sps:$4 sm:$0xff]  }
  0x27   :  { %998 = vmatpush2.bf16.msra.mxu0 %v1390_v30  ;;  %v1522_v30 = vld [vmem:[%s2151_s1 + $0x158] ss:$40 sps:$4 sm:$0xff]  }
  0x28   :  { %999 = vmatprep.subr.bf16.mxu0 %v1391_v31  ;;  %1037 = vmatpush2.bf16.msra.mxu1 %v1458_v48  ;;  %v1530_v31 = vld [vmem:[%s2151_s1 + $0x10c] ss:$40 sps:$4 sm:$0xff]   ;;  %v1495_v48 = vld [vmem:[%s2151_s1 + $0x330] ss:$40 sps:$4 sm:$0xff]  }
  0x29   :  { %1038 = vmatprep.subr.bf16.mxu1 %v1462_v49  ;;  %v1552_v49 = vld [vmem:[%s2151_s1 + $0x4c8] ss:$40 sps:$4 sm:$0xff]  }
  0x2b   :  { %1000 = vmatpush2.bf16.msra.mxu0 %v1393_v34  ;;  %v1528_v34 = vld [vmem:[%s2151_s1 + $0x108] ss:$40 sps:$4 sm:$0xff]  }
  0x2c   :  { %1001 = vmatprep.subr.bf16.mxu0 %v1394_v35  ;;  %1039 = vmatpush2.bf16.msra.mxu1 %v1464_v52  ;;  %v1536_v35 = vld [vmem:[%s2151_s1 + $0xbc] ss:$40 sps:$4 sm:$0xff]   ;;  %v1501_v52 = vld [vmem:[%s2151_s1 + $0x2e0] ss:$40 sps:$4 sm:$0xff]  }
  0x2d   :  { %1040 = vmatprep.subr.bf16.mxu1 %v1468_v53  ;;  %v1558_v53 = vld [vmem:[%s2151_s1 + $0x478] ss:$40 sps:$4 sm:$0xff]  }
  0x2f   :  { %1002 = vmatpush2.bf16.msra.mxu0 %v1396_v38  ;;  %v1534_v38 = vld [vmem:[%s2151_s1 + $0xb8] ss:$40 sps:$4 sm:$0xff]  }
  0x30   :  { %1003 = vmatprep.subr.bf16.mxu0 %v1397_v39  ;;  %1041 = vmatpush2.bf16.msra.mxu1 %v1470_v56  ;;  %v1542_v39 = vld [vmem:[%s2151_s1 + $0x6c] ss:$40 sps:$4 sm:$0xff]   ;;  %v1507_v56 = vld [vmem:[%s2151_s1 + $0x290] ss:$40 sps:$4 sm:$0xff]  }
  0x31   :  { %1042 = vmatprep.subr.bf16.mxu1 %v1474_v57  ;;  %v1564_v57 = vld [vmem:[%s2151_s1 + $0x428] ss:$40 sps:$4 sm:$0xff]  }
  0x33   :  { %1004 = vmatpush2.bf16.msra.mxu0 %v1399_v42  ;;  %v1491_v42 = vld [vmem:[%s2151_s1 + $0x384] ss:$40 sps:$4 sm:$0xff]  }
  0x34   :  { %1005 = vmatprep.subr.bf16.mxu0 %v1400_v43  ;;  %1043 = vmatpush2.bf16.msra.mxu1 %v1476_v61  ;;  %v1548_v43 = vld [vmem:[%s2151_s1 + $0x1c] ss:$40 sps:$4 sm:$0xff]   ;;  %v1513_v61 = vld [vmem:[%s2151_s1 + $0x250] ss:$40 sps:$4 sm:$0xff]  }
  0x35   :  { %1044 = vmatprep.subr.bf16.mxu1 %v1480_v62  ;;  %v1570_v62 = vld [vmem:[%s2151_s1 + $0x3d8] ss:$40 sps:$4 sm:$0xff]  }
  0x37   :  { %1006 = vmatpush2.bf16.msra.mxu0 %v1402_v46  ;;  %v1497_v46 = vld [vmem:[%s2151_s1 + $0x334] ss:$40 sps:$4 sm:$0xff]  }
  0x38   :  { %1007 = vmatprep.subr.bf16.mxu0 %v1403_v47  ;;  %1045 = vmatpush2.bf16.msra.mxu1 %v1482_v1  ;;  %v1554_v47 = vld [vmem:[%s2151_s1 + $0x4cc] ss:$40 sps:$4 sm:$0xff]   ;;  %v1519_v1 = vld [vmem:[%s2151_s1 + $0x200] ss:$40 sps:$4 sm:$0xff]  }
  0x39   :  { %1046 = vmatprep.subr.bf16.mxu1 %v1486_v2  ;;  %v1576_v2 = vld [vmem:[%s2151_s1 + $0x388] ss:$40 sps:$4 sm:$0xff]  }
  0x3b   :  { %1008 = vmatpush2.bf16.msra.mxu0 %v1405_v50  ;;  %v1503_v50 = vld [vmem:[%s2151_s1 + $0x2e4] ss:$40 sps:$4 sm:$0xff]  }
  0x3c   :  { %1009 = vmatprep.subr.bf16.mxu0 %v1409_v51  ;;  %1047 = vmatpush2.bf16.msra.mxu1 %v1488_v5  ;;  %v1560_v51 = vld [vmem:[%s2151_s1 + $0x47c] ss:$40 sps:$4 sm:$0xff]   ;;  %v1525_v5 = vld [vmem:[%s2151_s1 + $0x1b0] ss:$40 sps:$4 sm:$0xff]  }
  0x3d   :  { %1048 = vmatprep.subr.bf16.mxu1 %v1492_v6  ;;  %v1582_v6 = vld [vmem:[%s2151_s1 + $0x338] ss:$40 sps:$4 sm:$0xff]  }
  0x3f   :  { %1010 = vmatpush2.bf16.msra.mxu0 %v1411_v54  ;;  %v1509_v54 = vld [vmem:[%s2151_s1 + $0x294] ss:$40 sps:$4 sm:$0xff]  }
  0x40   :  { %1061 = vmatprep.subr.bf16.mxu0 %v1419_v55  ;;  %1049 = vmatpush2.bf16.msra.mxu1 %v1494_v9  ;;  %v1566_v55 = vld [vmem:[%s2151_s1 + $0x42c] ss:$40 sps:$4 sm:$0xff]   ;;  %v1588_v9 = vld [vmem:[%s2151_s1 + $0x2e8] ss:$40 sps:$4 sm:$0xff]  }
  0x41   :  { %1050 = vmatprep.subr.bf16.mxu1 %v1498_v10  ;;  %v1539_v10 = vld [vmem:[%s2151_s1 + $0x114] ss:$40 sps:$4 sm:$0xff]  }
  0x42   :  { %1012 = vmatmul.mubr.bf16.vlgmr.msra.gmra.mxu0 %v1799_v58 }
  0x43   :  { %1062 = vmatpush1.bf16.msra.mxu0 %v1417_v59  ;;  %1093 = vmatprep.mubr.bf16.mxu0 %v1679_v19  ;;  %v1515_v59 = vld [vmem:[%s2151_s1 + $0x254] ss:$40 sps:$4 sm:$0xff]  }
  0x44   :  { %1063 = vmatprep.subr.bf16.mxu0 %v1425_v60  ;;  %1051 = vmatpush2.bf16.msra.mxu1 %v1500_v13  ;;  %v1572_v60 = vld [vmem:[%s2151_s1 + $0x3dc] ss:$40 sps:$4 sm:$0xff]   ;;  %v1594_v13 = vld [vmem:[%s2151_s1 + $0x298] ss:$40 sps:$4 sm:$0xff]  }
  0x45   :  { %1102 = vmatprep.subr.bf16.mxu1 %v1506_v14  ;;  %v1545_v14 = vld [vmem:[%s2151_s1 + $0xc4] ss:$40 sps:$4 sm:$0xff]  }
  0x47   :  { %1064 = vmatpush1.bf16.msra.mxu0 %v1423_v63  ;;  %1053 = vmatmul.mubr.bf16.vlgmr.msra.gmra.mxu1 %v1799_v58  ;;  %v1521_v63 = vld [vmem:[%s2151_s1 + $0x204] ss:$40 sps:$4 sm:$0xff]  }
  0x48   :  { %1065 = vmatprep.subr.bf16.mxu0 %v1431_v0  ;;  %1103 = vmatpush1.bf16.msra.mxu1 %v1504_v17  ;;  %v1578_v0 = vld [vmem:[%s2151_s1 + $0x38c] ss:$40 sps:$4 sm:$0xff]   ;;  %v1549_v17 = vld [vmem:[%s2151_s1 + $0x70] ss:$40 sps:$4 sm:$0xff]  }
  0x49   :  { %1104 = vmatprep.subr.bf16.mxu1 %v1512_v18  ;;  %1134 = vmatprep.mubr.bf16.mxu1 %v1679_v19  ;;  %v1557_v18 = vld [vmem:[%s2151_s1 + $0x24] ss:$40 sps:$4 sm:$0xff]  }
  0x4b   :  { %1066 = vmatpush1.bf16.msra.mxu0 %v1429_v3  ;;  %v1527_v3 = vld [vmem:[%s2151_s1 + $0x1b4] ss:$40 sps:$4 sm:$0xff]  }
  0x4c   :  { %1067 = vmatprep.subr.bf16.mxu0 %v1437_v4  ;;  %1105 = vmatpush1.bf16.msra.mxu1 %v1510_v22  ;;  %v1584_v4 = vld [vmem:[%s2151_s1 + $0x33c] ss:$40 sps:$4 sm:$0xff]   ;;  %v1561_v22 = vld [vmem:[%s2151_s1 + $0x4d0] ss:$40 sps:$4 sm:$0xff]  }
  0x4d   :  { %1106 = vmatprep.subr.bf16.mxu1 %v1518_v23  ;;  %v1569_v23 = vld [vmem:[%s2151_s1 + $0x484] ss:$40 sps:$4 sm:$0xff]  }
  0x4f   :  { %1068 = vmatpush1.bf16.msra.mxu0 %v1435_v7  ;;  %v1533_v7 = vld [vmem:[%s2151_s1 + $0x164] ss:$40 sps:$4 sm:$0xff]  }
  0x50   :  { %1069 = vmatprep.subr.bf16.mxu0 %v1443_v8  ;;  %1107 = vmatpush1.bf16.msra.mxu1 %v1516_v26  ;;  %v1531_v8 = vld [vmem:[%s2151_s1 + $0x160] ss:$40 sps:$4 sm:$0xff]   ;;  %v1573_v26 = vld [vmem:[%s2151_s1 + $0x430] ss:$40 sps:$4 sm:$0xff]  }
  0x51   :  { %1108 = vmatprep.subr.bf16.mxu1 %v1524_v27  ;;  %v1581_v27 = vld [vmem:[%s2151_s1 + $0x3e4] ss:$40 sps:$4 sm:$0xff]  }
  0x53   :  { %1070 = vmatpush1.bf16.msra.mxu0 %v1441_v11  ;;  %v1596_v11 = vld [vmem:[%s2151_s1 + $0x29c] ss:$40 sps:$4 sm:$0xff]  }
  0x54   :  { %1071 = vmatprep.subr.bf16.mxu0 %v1449_v12  ;;  %1109 = vmatpush1.bf16.msra.mxu1 %v1522_v30  ;;  %v1537_v12 = vld [vmem:[%s2151_s1 + $0x110] ss:$40 sps:$4 sm:$0xff]  }
  0x55   :  { %1110 = vmatprep.subr.bf16.mxu1 %v1530_v31  ;;  %v1585_v30 = vld [vmem:[%s2151_s1 + $0x390] ss:$40 sps:$4 sm:$0xff]   ;;  %v1593_v31 = vld [vmem:[%s2151_s1 + $0x344] ss:$40 sps:$4 sm:$0xff]  }
  0x57   :  { %1072 = vmatpush1.bf16.msra.mxu0 %v1447_v15  ;;  %v1543_v15 = vld [vmem:[%s2151_s1 + $0xc0] ss:$40 sps:$4 sm:$0xff]  }
  0x58   :  { %1073 = vmatprep.subr.bf16.mxu0 %v1455_v16  ;;  %1111 = vmatpush1.bf16.msra.mxu1 %v1528_v34  ;;  %v1551_v16 = vld [vmem:[%s2151_s1 + $0x74] ss:$40 sps:$4 sm:$0xff]   ;;  %v1597_v34 = vld [vmem:[%s2151_s1 + $0x2f0] ss:$40 sps:$4 sm:$0xff]  }
  0x59   :  { %1112 = vmatprep.subr.bf16.mxu1 %v1536_v35  ;;  %v1602_v35 = vld [vmem:[%s2151_s1 + $0x2a4] ss:$40 sps:$4 sm:$0xff]  }
  0x5b   :  { %1074 = vmatpush1.bf16.msra.mxu0 %v1453_v20  ;;  %v1555_v20 = vld [vmem:[%s2151_s1 + $0x20] ss:$40 sps:$4 sm:$0xff]  }
  0x5c   :  { %1075 = vmatprep.subr.bf16.mxu0 %v1461_v21  ;;  %1113 = vmatpush1.bf16.msra.mxu1 %v1534_v38  ;;  %v1563_v21 = vld [vmem:[%s2151_s1 + $0x4d4] ss:$40 sps:$4 sm:$0xff]  }
  0x5d   :  { %1114 = vmatprep.subr.bf16.mxu1 %v1542_v39 }
  0x5f   :  { %1076 = vmatpush1.bf16.msra.mxu0 %v1459_v24  ;;  %v1567_v24 = vld [vmem:[%s2151_s1 + $0x480] ss:$40 sps:$4 sm:$0xff]  }
  0x60   :  { %1077 = vmatprep.subr.bf16.mxu0 %v1467_v25  ;;  %1115 = vmatpush1.bf16.msra.mxu1 %v1540_v41  ;;  %v1575_v25 = vld [vmem:[%s2151_s1 + $0x434] ss:$40 sps:$4 sm:$0xff]  }
  0x61   :  { %1116 = vmatprep.subr.bf16.mxu1 %v1548_v43 }
  0x63   :  { %1078 = vmatpush2.bf16.msra.mxu0 %v1465_v28  ;;  %v1579_v28 = vld [vmem:[%s2151_s1 + $0x3e0] ss:$40 sps:$4 sm:$0xff]  }
  0x64   :  { %1079 = vmatprep.subr.bf16.mxu0 %v1473_v29  ;;  %1117 = vmatpush1.bf16.msra.mxu1 %v1546_v45  ;;  %v1587_v29 = vld [vmem:[%s2151_s1 + $0x394] ss:$40 sps:$4 sm:$0xff]  }
  0x65   :  { %1118 = vmatprep.subr.bf16.mxu1 %v1554_v47 }
  0x67   :  { %1080 = vmatpush2.bf16.msra.mxu0 %v1471_v32  ;;  %v1591_v32 = vld [vmem:[%s2151_s1 + $0x340] ss:$40 sps:$4 sm:$0xff]  }
  0x68   :  { %1081 = vmatprep.subr.bf16.mxu0 %v1479_v33  ;;  %1119 = vmatpush2.bf16.msra.mxu1 %v1552_v49  ;;  %v1599_v33 = vld [vmem:[%s2151_s1 + $0x2f4] ss:$40 sps:$4 sm:$0xff]  }
  0x69   :  { %1120 = vmatprep.subr.bf16.mxu1 %v1560_v51 }
  0x6b   :  { %1082 = vmatpush2.bf16.msra.mxu0 %v1477_v36  ;;  %v1600_v36 = vld [vmem:[%s2151_s1 + $0x2a0] ss:$40 sps:$4 sm:$0xff]  }
  0x6c   :  { %1083 = vmatprep.subr.bf16.mxu0 %v1485_v37  ;;  %1121 = vmatpush2.bf16.msra.mxu1 %v1558_v53 }
  0x6d   :  { %1122 = vmatprep.subr.bf16.mxu1 %v1566_v55 }
  0x6f   :  { %1084 = vmatpush2.bf16.msra.mxu0 %v1483_v40 }
  0x70   :  { %1085 = vmatprep.subr.bf16.mxu0 %v1491_v42  ;;  %1123 = vmatpush2.bf16.msra.mxu1 %v1564_v57 }
  0x71   :  { %1124 = vmatprep.subr.bf16.mxu1 %v1572_v60 }
  0x73   :  { %1086 = vmatpush2.bf16.msra.mxu0 %v1489_v44 }
  0x74   :  { %1087 = vmatprep.subr.bf16.mxu0 %v1497_v46  ;;  %1125 = vmatpush2.bf16.msra.mxu1 %v1570_v62 }
  0x75   :  { %1126 = vmatprep.subr.bf16.mxu1 %v1578_v0 }
  0x77   :  { %1088 = vmatpush2.bf16.msra.mxu0 %v1495_v48 }
  0x78   :  { %1089 = vmatprep.subr.bf16.mxu0 %v1503_v50  ;;  %1127 = vmatpush2.bf16.msra.mxu1 %v1576_v2 }
  0x79   :  { %1128 = vmatprep.subr.bf16.mxu1 %v1584_v4 }
  0x7b   :  { %1090 = vmatpush2.bf16.msra.mxu0 %v1501_v52 }
  0x7c   :  { %1091 = vmatprep.subr.bf16.mxu0 %v1509_v54  ;;  %1129 = vmatpush2.bf16.msra.mxu1 %v1582_v6 }
  0x7f   :  { %1092 = vmatpush2.bf16.msra.mxu0 %v1507_v56 }
  0x80   :  { %1143 = vmatprep.subr.bf16.mxu0 %v1515_v59 }
  0x82   :  { %1094 = vmatmul.mubr.bf16.vlgmr.msra.gmra.mxu0 %v1799_v58 }
  0x83   :  { %1144 = vmatpush1.bf16.msra.mxu0 %v1513_v61  ;;  %1175 = vmatprep.mubr.bf16.mxu0 %v1679_v19  ;;  %v1590_v19 = vld [vmem:[%s2151_s1 + $0x2ec] ss:$40 sps:$4 sm:$0xff]  }
  0x84   :  { %1145 = vmatprep.subr.bf16.mxu0 %v1521_v63  ;;  %1130 = vmatprep.subr.bf16.mxu1 %v1590_v19 }
  0x85   :  { %1131 = vmatpush2.bf16.msra.mxu1 %v1588_v9 }
  0x86   :  { %1132 = vmatprep.subr.bf16.mxu1 %v1596_v11 }
  0x87   :  { %1146 = vmatpush1.bf16.msra.mxu0 %v1519_v1 }
  0x88   :  { %1147 = vmatprep.subr.bf16.mxu0 %v1527_v3 }
  0x89   :  { %1133 = vmatpush2.bf16.msra.mxu1 %v1594_v13 }
  0x8b   :  { %1148 = vmatpush1.bf16.msra.mxu0 %v1525_v5 }
  0x8c   :  { %1149 = vmatprep.subr.bf16.mxu0 %v1533_v7  ;;  %1135 = vmatmul.mubr.bf16.vlgmr.msra.gmra.mxu1 %v1799_v58 }
  0x8f   :  { %1150 = vmatpush1.bf16.msra.mxu0 %v1531_v8 }
  0x90   :  { %1151 = vmatprep.subr.bf16.mxu0 %v1539_v10 }
  0x93   :  { %1152 = vmatpush1.bf16.msra.mxu0 %v1537_v12 }
  0x94   :  { %1153 = vmatprep.subr.bf16.mxu0 %v1545_v14 }
  0x97   :  { %1154 = vmatpush1.bf16.msra.mxu0 %v1543_v15 }
  0x98   :  { %1155 = vmatprep.subr.bf16.mxu0 %v1551_v16 }
  0x9b   :  { %1156 = vmatpush1.bf16.msra.mxu0 %v1549_v17 }
  0x9c   :  { %1157 = vmatprep.subr.bf16.mxu0 %v1557_v18 }
  0x9f   :  { %1158 = vmatpush1.bf16.msra.mxu0 %v1555_v20 }
  0xa0   :  { %1159 = vmatprep.subr.bf16.mxu0 %v1563_v21 }
  0xa3   :  { %1160 = vmatpush2.bf16.msra.mxu0 %v1561_v22 }
  0xa4   :  { %1161 = vmatprep.subr.bf16.mxu0 %v1569_v23 }
  0xa7   :  { %1162 = vmatpush2.bf16.msra.mxu0 %v1567_v24 }
  0xa8   :  { %1163 = vmatprep.subr.bf16.mxu0 %v1575_v25 }
  0xab   :  { %1164 = vmatpush2.bf16.msra.mxu0 %v1573_v26 }
  0xac   :  { %1165 = vmatprep.subr.bf16.mxu0 %v1581_v27 }
  0xaf   :  { %1166 = vmatpush2.bf16.msra.mxu0 %v1579_v28 }
  0xb0   :  { %1167 = vmatprep.subr.bf16.mxu0 %v1587_v29 }
  0xb3   :  { %1168 = vmatpush2.bf16.msra.mxu0 %v1585_v30 }
  0xb4   :  { %1169 = vmatprep.subr.bf16.mxu0 %v1593_v31 }
  0xb7   :  { %1170 = vmatpush2.bf16.msra.mxu0 %v1591_v32 }
  0xb8   :  { %1171 = vmatprep.subr.bf16.mxu0 %v1599_v33 }
  0xbb   :  { %1172 = vmatpush2.bf16.msra.mxu0 %v1597_v34 }
  0xbc   :  { %1173 = vmatprep.subr.bf16.mxu0 %v1602_v35 }
  0xbf   :  { %1174 = vmatpush2.bf16.msra.mxu0 %v1600_v36 }
  0xc2   :  { %1176 = vmatmul.mubr.bf16.vlgmr.msra.gmra.mxu0 %v1799_v58 }
 0x102   :  { %v1013_v37 = vpop.f32.mrf.mxu0 }
 0x103   :  { %1184 = vst [vmem:[%s2153_s2] sm:$0x3f] %v1013_v37 }
 0x104   :  { %v1015_v38 = vpop.f32.mrf.mxu0 }
 0x105   :  { %1185 = vst [vmem:[%s2153_s2 + $0x8] sm:$0x3f] %v1015_v38 }
 0x106   :  { %v1017_v39 = vpop.f32.mrf.mxu0 }
 0x107   :  { %v1054_v41 = vpop.f32.mrf.mxu1 }
 0x108   :  { %v1018_v40 = vpop.f32.mrf.mxu0  ;;  %1186 = vst [vmem:[%s2153_s2 + $0x10] sm:$0x3f] %v1054_v41 }
 0x109   :  { %v1056_v42 = vpop.f32.mrf.mxu1 }
 0x10a   :  { %1187 = vst [vmem:[%s2153_s2 + $0x18] sm:$0x3f] %v1056_v42 }
 0x10b   :  { %v1058_v58 = vpop.f32.mrf.mxu1 }
 0x10d   :  { %v1059_v43 = vpop.f32.mrf.mxu1 }
 0x142   :  { %v1095_v44 = vpop.f32.mrf.mxu0 }
 0x143   :  { %1188 = vst [vmem:[%s2153_s2 + $0x20] sm:$0x3f] %v1095_v44 }
 0x144   :  { %v1097_v45 = vpop.f32.mrf.mxu0 }
 0x145   :  { %1189 = vst [vmem:[%s2153_s2 + $0x28] sm:$0x3f] %v1097_v45 }
 0x146   :  { %v1099_v46 = vpop.f32.mrf.mxu0 }
 0x148   :  { %v1100_v47 = vpop.f32.mrf.mxu0 }
 0x14c   :  { %v1136_v48 = vpop.f32.mrf.mxu1 }
 0x14d   :  { %1190 = vst [vmem:[%s2153_s2 + $0x30] sm:$0x3f] %v1136_v48 }
 0x14e   :  { %v1138_v49 = vpop.f32.mrf.mxu1 }
 0x14f   :  { %1191 = vst [vmem:[%s2153_s2 + $0x38] sm:$0x3f] %v1138_v49 }
 0x150   :  { %v1140_v50 = vpop.f32.mrf.mxu1 }
 0x152   :  { %v1141_v51 = vpop.f32.mrf.mxu1 }
 0x182   :  { %v1177_v52 = vpop.f32.mrf.mxu0 }
 0x183   :  { %1192 = vst [vmem:[%s2153_s2 + $0x40] sm:$0x3f] %v1177_v52 }
 0x184   :  { %v1179_v53 = vpop.f32.mrf.mxu0 }
 0x185   :  { %1194 = vst.msk [vmem:[%s2153_s2 + $0x48] sm:$0x3f] %vm1193_vm0, %v1179_v53 }
 0x186   :  { %v1181_v54 = vpop.f32.mrf.mxu0 }
 0x188   :  { %v1182_v55 = vpop.f32.mrf.mxu0 }

// kernel: forward.4
= control target key start
LH: loop header
LB: loop body
LE: loop exit
PB: predicated region body
PF: predicated region fallthrough
CT: control target
= control target key end

     0   :  { %vm352_vm0 = vcmask 1045504   ;;  %v639_v34 = vmov 0.0   ;;  %vm640_vm1 = vmmov 0   ;;  %vm348_vm2 = vcmask 621568   ;;  %s797_s1 = inlined_call_operand.vmem [shape: bf16[588,128], index: 1, kind: input, shape index: {}]   ;;  %s798_s0 = inlined_call_operand.vmem [shape: bf16[12,588], index: 0, kind: input, shape index: {}]   ;;  %s799_s2 = inlined_call_operand.vmem [shape: f32[1,128], index: 2, kind: input, shape index: {}]   ;;  %s800_s3 = inlined_call_operand.vmem [shape: f32[12,128], index: 3, kind: output, shape index: {}]  }
   0x1   :  { %v595_v0 = vld [vmem:[%s797_s1 + $0x78] sm:$0xff]   ;;  %v599_v4 = vld [vmem:[%s797_s1 + $0x70] sm:$0xff]   ;;  %v603_v8 = vld [vmem:[%s797_s1 + $0x68] sm:$0xff]  }
   0x2   :  { %v596_v1 = vld [vmem:[%s797_s1 + $0x38] sm:$0xff]   ;;  %529 = vmatprep.subr.bf16.mxu0 %v595_v0  ;;  %v600_v5 = vld [vmem:[%s797_s1 + $0x30] sm:$0xff]   ;;  %v604_v9 = vld [vmem:[%s797_s1 + $0x28] sm:$0xff]  }
   0x3   :  { %v597_v2 = vld [vmem:[%s797_s1 + $0xf8] sm:$0xff]   ;;  %530 = vmatpush3.bf16.msra.mxu0 %v596_v1  ;;  %v601_v6 = vld [vmem:[%s797_s1 + $0xf0] sm:$0xff]   ;;  %v605_v10 = vld [vmem:[%s797_s1 + $0xe8] sm:$0xff]  }
   0x4   :  { %v598_v3 = vld [vmem:[%s797_s1 + $0xb8] sm:$0xff]   ;;  %551 = vmatprep.subr.bf16.mxu1 %v597_v2  ;;  %531 = vmatprep.subr.bf16.mxu0 %v599_v4  ;;  %v602_v7 = vld [vmem:[%s797_s1 + $0xb0] sm:$0xff]   ;;  %v606_v11 = vld [vmem:[%s797_s1 + $0xa8] sm:$0xff]  }
   0x5   :  { %552 = vmatpush3.bf16.msra.mxu1 %v598_v3  ;;  %v607_v12 = vld [vmem:[%s797_s1 + $0x60] sm:$0xff]   ;;  %v611_v16 = vld [vmem:[%s797_s1 + $0x58] sm:$0xff]   ;;  %v615_v20 = vld [vmem:[%s797_s1 + $0x50] sm:$0xff]  }
   0x6   :  { %553 = vmatprep.subr.bf16.mxu1 %v601_v6  ;;  %v608_v13 = vld [vmem:[%s797_s1 + $0x20] sm:$0xff]   ;;  %v612_v17 = vld [vmem:[%s797_s1 + $0x18] sm:$0xff]   ;;  %v616_v21 = vld [vmem:[%s797_s1 + $0x10] sm:$0xff]  }
   0x7   :  { %532 = vmatpush3.bf16.msra.mxu0 %v600_v5  ;;  %v609_v14 = vld [vmem:[%s797_s1 + $0xe0] sm:$0xff]   ;;  %v613_v18 = vld [vmem:[%s797_s1 + $0xd8] sm:$0xff]   ;;  %v617_v22 = vld [vmem:[%s797_s1 + $0xd0] sm:$0xff]  }
   0x8   :  { %533 = vmatprep.subr.bf16.mxu0 %v603_v8  ;;  %v610_v15 = vld [vmem:[%s797_s1 + $0xa0] sm:$0xff]   ;;  %v614_v19 = vld [vmem:[%s797_s1 + $0x98] sm:$0xff]   ;;  %v618_v23 = vld [vmem:[%s797_s1 + $0x90] sm:$0xff]  }
   0x9   :  { %554 = vmatpush3.bf16.msra.mxu1 %v602_v7  ;;  %v619_v24 = vld [vmem:[%s797_s1 + $0x48] sm:$0xff]   ;;  %v623_v28 = vld [vmem:[%s797_s1 + $0x40] sm:$0xff]   ;;  %v634_v39 = vld [vmem:[%s797_s1 + $0x118] sm:$0xff]  }
   0xa   :  { %555 = vmatprep.subr.bf16.mxu1 %v605_v10  ;;  %v620_v25 = vld [vmem:[%s797_s1 + $0x8] sm:$0xff]   ;;  %v624_v29 = vld [vmem:[%s797_s1] sm:$0xff]   ;;  %v635_v40 = vld [vmem:[%s797_s1 + $0x110] sm:$0xff]  }
   0xb   :  { %534 = vmatpush3.bf16.msra.mxu0 %v604_v9  ;;  %v621_v26 = vld [vmem:[%s797_s1 + $0xc8] sm:$0xff]   ;;  %v625_v30 = vld [vmem:[%s797_s1 + $0xc0] sm:$0xff]  }
   0xc   :  { %535 = vmatprep.subr.bf16.mxu0 %v607_v12  ;;  %v622_v27 = vld [vmem:[%s797_s1 + $0x88] sm:$0xff]   ;;  %v626_v31 = vld [vmem:[%s798_s0] ss:$20 sps:$4 sm:$0x3f]  }
   0xd   :  { %556 = vmatpush3.bf16.msra.mxu1 %v606_v11  ;;  %v628_v32 = vld [vmem:[%s798_s0 + $0x4] ss:$20 sps:$4 sm:$0x3f]   ;;  %v630_v35 = vld [vmem:[%s798_s0 + $0x8] ss:$20 sps:$4 sm:$0x3f]  }
   0xe   :  { %557 = vmatprep.subr.bf16.mxu1 %v609_v14  ;;  %v629_v33 = vld [vmem:[%s797_s1 + $0x80] sm:$0xff]   ;;  %388 = vmatprep.mubr.bf16.mxu0 %v628_v32  ;;  %v636_v41 = vld [vmem:[%s797_s1 + $0x108] sm:$0xff]  }
   0xf   :  { %536 = vmatpush3.bf16.msra.mxu0 %v608_v13  ;;  %v632_v36 = vld [vmem:[%s798_s0 + $0xc] ss:$20 sps:$4 sm:$0x3f]   ;;  %v638_v43 = vld [vmem:[%s798_s0 + $0x10] ss:$20 sps:$4 sm:$0x3f]  }
  0x10   :  { %537 = vmatprep.subr.bf16.mxu0 %v611_v16  ;;  %v633_v37 = vld [vmem:[%s797_s1 + $0x120] sm:$0x3f]   ;;  %429 = vmatprep.mubr.bf16.mxu1 %v632_v36 }
  0x11   :  { %558 = vmatpush3.bf16.msra.mxu1 %v610_v15  ;;  %v354_v38 = vsel %vm352_vm0, %v633_v37, 0  ;;  %v637_v42 = vld [vmem:[%s797_s1 + $0x100] sm:$0xff]  }
  0x12   :  { %559 = vmatprep.subr.bf16.mxu1 %v613_v18  ;;  %v485_v50 = vld [vmem:[%s799_s2] ss:$0 sm:$0xff] }
  0x13   :  { %538 = vmatpush3.bf16.msra.mxu0 %v612_v17 }
  0x14   :  { %539 = vmatprep.subr.bf16.mxu0 %v615_v20 }
  0x15   :  { %560 = vmatpush3.bf16.msra.mxu1 %v614_v19 }
  0x16   :  { %561 = vmatprep.subr.bf16.mxu1 %v617_v22 }
  0x17   :  { %540 = vmatpush3.bf16.msra.mxu0 %v616_v21 }
  0x18   :  { %541 = vmatprep.subr.bf16.mxu0 %v619_v24 }
  0x19   :  { %562 = vmatpush3.bf16.msra.mxu1 %v618_v23 }
  0x1a   :  { %563 = vmatprep.subr.bf16.mxu1 %v621_v26 }
  0x1b   :  { %542 = vmatpush3.bf16.msra.mxu0 %v620_v25 }
  0x1c   :  { %543 = vmatprep.subr.bf16.mxu0 %v623_v28 }
  0x1d   :  { %564 = vmatpush3.bf16.msra.mxu1 %v622_v27 }
  0x1e   :  { %565 = vmatprep.subr.bf16.mxu1 %v625_v30 }
  0x1f   :  { %544 = vmatpush3.bf16.msra.mxu0 %v624_v29 }
  0x20   :  { %579 = vmatprep.subr.bf16.mxu0 %v639_v34 }
  0x21   :  { %566 = vmatpush3.bf16.msra.mxu1 %v629_v33 }
  0x22   :  { %389 = vmatmul.mubr.bf16.vlgmr.msra.gmra.mxu0 %v626_v31 }
  0x23   :  { %589 = vmatprep.mubr.msk.bf16.mxu0 %vm640_vm1, %v639_v34  ;;  %580 = vmatpush3.bf16.msra.mxu0 %v354_v38 }
  0x24   :  { %430 = vmatmul.mubr.bf16.vlgmr.msra.gmra.mxu1 %v630_v35  ;;  %581 = vmatprep.subr.bf16.mxu0 %v639_v34 }
  0x27   :  { %582 = vmatpush3.bf16.msra.mxu0 %v634_v39 }
  0x28   :  { %583 = vmatprep.subr.bf16.mxu0 %v639_v34 }
  0x2b   :  { %584 = vmatpush3.bf16.msra.mxu0 %v635_v40 }
  0x2c   :  { %585 = vmatprep.subr.bf16.mxu0 %v639_v34 }
  0x2f   :  { %586 = vmatpush3.bf16.msra.mxu0 %v636_v41 }
  0x30   :  { %587 = vmatprep.subr.bf16.mxu0 %v639_v34 }
  0x33   :  { %588 = vmatpush3.bf16.msra.mxu0 %v637_v42 }
  0x36   :  { %590 = vmatmul.mubr.msk.bf16.vlgmr.msra.gmra.mxu0 %vm348_vm2, %v638_v43 }
  0xe2   :  { %v545_v44 = vpop.f32.mrf.mxu0 }
  0xe4   :  { %v546_v45 = vpop.f32.mrf.mxu0  ;;  %v567_v46 = vpop.f32.mrf.mxu1 }
  0xe5   :  { %v547_v49 = vadd.f32 %v546_v45, %v545_v44 }
  0xe6   :  { %v548_v47 = vpop.f32.mrf.mxu0  ;;  %v568_v48 = vpop.f32.mrf.mxu1 }
  0xe7   :  { %v391_v53 = vadd.f32 %v547_v49, %v485_v50  ;;  %v569_v54 = vadd.f32 %v568_v48, %v567_v46 }
  0xe8   :  { %v549_v51 = vpop.f32.mrf.mxu0  ;;  %v570_v52 = vpop.f32.mrf.mxu1 }
  0xe9   :  { %v550_v55 = vadd.f32 %v549_v51, %v548_v47  ;;  %v432_v59 = vadd.f32 %v569_v54, %v391_v53 }
  0xea   :  { %v571_v56 = vpop.f32.mrf.mxu1 }
  0xeb   :  { %v394_v57 = vadd.f32 %v550_v55, %v485_v50  ;;  %v572_v58 = vadd.f32 %v571_v56, %v570_v52 }
  0xed   :  { %v435_v63 = vadd.f32 %v572_v58, %v394_v57 }
  0xf6   :  { %v472_v60 = vpop.f32.mrf.mxu0 }
  0xf7   :  { %v473_v61 = vadd.f32 %v472_v60, %v432_v59 }
  0xf8   :  { %v591_v62 = vpop.f32.mrf.mxu0 }
  0xf9   :  { %479 = vst [vmem:[%s800_s3] sm:$0xff] %v473_v61 }
  0xfa   :  { %v475_v0 = vpop.f32.mrf.mxu0 }
  0xfb   :  { %v476_v1 = vadd.f32 %v475_v0, %v435_v63 }
  0xfc   :  { %v592_v2 = vpop.f32.mrf.mxu0 }
  0xfd   :  { %480 = vst [vmem:[%s800_s3 + $0x8] sm:$0xf] %v476_v1 }

// kernel: forward.5
= control target key start
LH: loop header
LB: loop body
LE: loop exit
PB: predicated region body
PF: predicated region fallthrough
CT: control target
= control target key end

     0   :  { %s3223_s21 = smov 0   ;;  %s3653_s0 = inlined_call_operand.vmem [shape: f32[14,128], index: 0, kind: input, shape index: {}]   ;;  %s3654_s1 = inlined_call_operand.vmem [shape: f32[14,14], index: 1, kind: input, shape index: {}]   ;;  %s3655_s2 = inlined_call_operand.vmem [shape: f32[12,1,128], index: 2, kind: input, shape index: {}]   ;;  %s3656_s3 = inlined_call_operand.vmem [shape: f32[12,1,128], index: 3, kind: input, shape index: {}]   ;;  %s3657_s4 = inlined_call_operand.vmem [shape: bf16[12,128,384], index: 4, kind: input, shape index: {}]   ;;  %s3658_s5 = inlined_call_operand.vmem [shape: f32[12,1,384], index: 5, kind: input, shape index: {}]   ;;  %s3659_s6 = inlined_call_operand.vmem [shape: bf16[12,128,128], index: 6, kind: input, shape index: {}]   ;;  %s3660_s7 = inlined_call_operand.vmem [shape: f32[12,1,128], index: 7, kind: input, shape index: {}]   ;;  %s3661_s8 = inlined_call_operand.vmem [shape: f32[12,1,128], index: 8, kind: input, shape index: {}]   ;;  %s3662_s9 = inlined_call_operand.vmem [shape: f32[12,1,128], index: 9, kind: input, shape index: {}]   ;;  %s3663_s10 = inlined_call_operand.vmem [shape: bf16[12,128,512], index: 10, kind: input, shape index: {}]   ;;  %s3664_s11 = inlined_call_operand.vmem [shape: f32[12,1,512], index: 11, kind: input, shape index: {}]   ;;  %s3665_s12 = inlined_call_operand.vmem [shape: bf16[12,512,128], index: 12, kind: input, shape index: {}]   ;;  %s3666_s13 = inlined_call_operand.vmem [shape: f32[12,1,128], index: 13, kind: input, shape index: {}]   ;;  %s3667_s14 = inlined_call_operand.vmem [shape: f32[1,1,128], index: 14, kind: input, shape index: {}]   ;;  %s3668_s15 = inlined_call_operand.vmem [shape: f32[1,1,128], index: 15, kind: input, shape index: {}]   ;;  %s3669_s16 = inlined_call_operand.vmem [shape: f32[14,128], index: 16, kind: output, shape index: {}]  }
   0x1   :  { %3674 = sst [smem:[#allocation4_spill]] %s3653_s0 }
   0x2   :  { %3675 = sst [smem:[#allocation5_spill]] %s3654_s1 }
   0x3   :  { %3676 = sst [smem:[#allocation6_spill]] %s3657_s4 }
   0x4   :  { %3677 = sst [smem:[#allocation7_spill]] %s3659_s6 }
   0x5   :  { %3678 = sst [smem:[#allocation8_spill]] %s3667_s14 }
   0x6   :  { %3679 = sst [smem:[#allocation9_spill]] %s3668_s15 }
   0x7   :  { %3680 = sst [smem:[#allocation10_spill]] %s3669_s16 }
   0x8 LB: > { %3681 = sst [smem:[#allocation3_spill]] %s3130_s21  ;;  %s3229_s22 = sadd.s32 4294967295, %s3130_s21   ;;  %s3130_s21 = sphi %s3223_s21, %s26_s21  }
   0x9   : > { %p2616_p0 = scmp.ge.s32.totalorder %s3130_s21, 1  ;;  %p553_p1 = scmp.lt.s32.totalorder %s3130_s21, 13 }
   0xb   : > { %p554_p2 = pnand %p2616_p0, %p553_p1 }
   0xc   : > { %p639_p3 = scmp.lt.s32.totalorder (!%p554_p2), %s3229_s22, 11  ;;  %s3682_s6 = sld [smem:[#allocation7_spill]] (!%p554_p2) }
   0xd   : > { %557 = sbr.rel (%p554_p2) target bundleno = 3227 (0xc9b), region = 84  ;;  %s3683_s4 = sld [smem:[#allocation6_spill]] (!%p554_p2) }
   0xe   : > { %p2625_p4 = scmp.ne.s32.totalorder (!%p554_p2), %s3229_s22, 0 }
  0x12   : > { %s3235_s23 = scalar_select %p639_p3, %s3229_s22, 11 }
  0x14   : > { %s2911_s30 = smul.u32 192, %s3235_s23  ;;  %s2742_s0 = sshll.u32 %s3235_s23, 6 }
  0x15   : > { %s2912_s17 = smul.u32 3, %s3235_s23  ;;  %s3251_s20 = scalar_lea.vmem %s3682_s6, %s2742_s0 }
  0x16   : > { %s3256_s21 = scalar_lea.vmem %s3683_s4, %s2911_s30  ;;  %s2743_s24 = sshll.u32 %s3235_s23, 8 }
  0x17   : > { %s3265_s29 = scalar_lea.vmem %s3658_s5, %s2912_s17  ;;  %s3279_s4 = scalar_lea.vmem %s3663_s10, %s2743_s24 }
  0x18   : > { %s2622_s16 = sshll.u32 %s3235_s23, 2  ;;  %s3290_s1 = scalar_lea.vmem %s3665_s12, %s2743_s24 }
  0x19   : > { %s3285_s17 = scalar_lea.vmem %s3664_s11, %s2622_s16  ;;  %s684_s19 = scalar_lea.vmem %s3666_s13, %s3235_s23 }
  0x1a   : > { %689 = sbr.rel (%p2625_p4) target bundleno = 34 (0x22), region = 88  ;;  %s3684_s6 = sld [smem:[#allocation4_spill]] (!%p2625_p4) }
  0x20   : > { %v690_v0 = vld [vmem:[%s3684_s6] sm:$0xff]  ;;  %v691_v1 = vld [vmem:[%s3684_s6 + $0x8] sm:$0x3f] }
  0x21   : > { %692 = vst [vmem:[#allocation2] sm:$0xff] %v690_v0  ;;  %693 = vst [vmem:[#allocation2 + $0x8] sm:$0x3f] %v691_v1 }
  0x22 PF: > { %vm702_vm0 = vcmask 1045504   ;;  %v2942_v5 = vld [vmem:[%s3256_s21 + $0xac] ss:$12 sps:$4 sm:$0xff]   ;;  %v2944_v6 = vld [vmem:[%s3256_s21 + $0xa8] ss:$12 sps:$4 sm:$0xff]   ;;  %v3132_v7 = vmov 0.0   ;;  %s3685_s24 = scalar_lea.vmem %s3655_s2, %s3235_s23  ;;  %s3686_s27 = scalar_lea.vmem %s3656_s3, %s3235_s23  ;;  %v777_v57 = vlaneseq }
  0x23   : > { %2823 = vmatprep.subr.bf16.mxu1 %v3132_v7  ;;  %v2945_v8 = vld [vmem:[%s3256_s21 + $0xb0] ss:$12 sps:$4 sm:$0xff]   ;;  %920 = vmatprep.subr.bf16.mxu0 %v2942_v5  ;;  %v2946_v18 = vld [vmem:[%s3256_s21 + $0x94] ss:$12 sps:$4 sm:$0xff]   ;;  %v2949_v20 = vld [vmem:[%s3256_s21 + $0x98] ss:$12 sps:$4 sm:$0xff]   ;;  %s3689_s26 = scalar_lea.vmem %s3661_s8, %s3235_s23  ;;  %s3690_s28 = scalar_lea.vmem %s3662_s9, %s3235_s23 }
  0x24   : > { %921 = vmatpush1.bf16.msra.mxu0 %v2944_v6  ;;  %2824 = vmatpush3.bf16.msra.mxu1 %v2945_v8  ;;  %v2948_v19 = vld [vmem:[%s3256_s21 + $0x90] ss:$12 sps:$4 sm:$0xff]   ;;  %v2952_v22 = vld [vmem:[%s3256_s21 + $0x78] ss:$12 sps:$4 sm:$0xff]   ;;  %v2953_v23 = vld [vmem:[%s3256_s21 + $0x80] ss:$12 sps:$4 sm:$0xff]  }
  0x25   : > { %2825 = vmatprep.subr.bf16.mxu1 %v3132_v7  ;;  %922 = vmatprep.subr.bf16.mxu0 %v2946_v18  ;;  %v2950_v21 = vld [vmem:[%s3256_s21 + $0x7c] ss:$12 sps:$4 sm:$0xff]   ;;  %v2954_v24 = vld [vmem:[%s3256_s21 + $0x64] ss:$12 sps:$4 sm:$0xff]   ;;  %v2956_v25 = vld [vmem:[%s3256_s21 + $0x60] ss:$12 sps:$4 sm:$0xff]  }
  0x26   : > { %v2957_v26 = vld [vmem:[%s3256_s21 + $0x68] ss:$12 sps:$4 sm:$0xff]   ;;  %v2958_v27 = vld [vmem:[%s3256_s21 + $0x4c] ss:$12 sps:$4 sm:$0xff]   ;;  %v2961_v29 = vld [vmem:[%s3256_s21 + $0x50] ss:$12 sps:$4 sm:$0xff]  }
  0x27   : > { %v2960_v28 = vld [vmem:[%s3256_s21 + $0x48] ss:$12 sps:$4 sm:$0xff]   ;;  %v3133_v31 = vmov 0   ;;  %vm3134_vm1 = vmmov 0   ;;  %v2964_v32 = vld [vmem:[%s3256_s21 + $0x30] ss:$12 sps:$4 sm:$0xff]  }
  0x28   : > { %v695_v2 = vld [vmem:[#allocation2 + $0x8] sm:$0x3f]  ;;  %v694_v4 = vld [vmem:[#allocation2] sm:$0xff]  ;;  %923 = vmatpush1.bf16.msra.mxu0 %v2948_v19  ;;  %2826 = vmatpush3.bf16.msra.mxu1 %v2949_v20  ;;  %v3366_v58 = vshrl.u32 %v777_v57, 7  ;;  %vm1007_vm2 = vcmask 261120   ;;  %vm1083_vm3 = vcmask 1046528  }
  0x29   : > { %v703_v3 = vsel %vm702_vm0, %v695_v2, 0.0  ;;  %2827 = vmatprep.subr.bf16.mxu1 %v3132_v7  ;;  %924 = vmatprep.subr.bf16.mxu0 %v2950_v21  ;;  %v2962_v30 = vld [vmem:[%s3256_s21 + $0x34] ss:$12 sps:$4 sm:$0xff]   ;;  %v2965_v33 = vld [vmem:[%s3256_s21 + $0x38] ss:$12 sps:$4 sm:$0xff]   ;;  %s3687_s14 = sld [smem:[#allocation5_spill]] }
  0x2a   : > { %704 = vadd.xlane.f32.xlu0 %v703_v3  ;;  %952 = vmatprep.mubr.bf16.mxu0 %v3133_v31  ;;  %v2966_v34 = vld [vmem:[%s3256_s21 + $0x1c] ss:$12 sps:$4 sm:$0xff]   ;;  %v2968_v35 = vld [vmem:[%s3256_s21 + $0x18] ss:$12 sps:$4 sm:$0xff]   ;;  %v2969_v36 = vld [vmem:[%s3256_s21 + $0x20] ss:$12 sps:$4 sm:$0xff]  }
  0x2b   : > { %2839 = vmatprep.mubr.msk.bf16.mxu1 %vm3134_vm1, %v3132_v7  ;;  %v2970_v37 = vld [vmem:[%s3256_s21 + $0x4] ss:$12 sps:$4 sm:$0xff]   ;;  %v2972_v38 = vld [vmem:[%s3256_s21] ss:$12 sps:$4 sm:$0xff]   ;;  %v2973_v39 = vld [vmem:[%s3256_s21 + $0x8] ss:$12 sps:$4 sm:$0xff]  }
  0x2c   : > { %925 = vmatpush1.bf16.msra.mxu0 %v2952_v22  ;;  %2828 = vmatpush3.bf16.msra.mxu1 %v2953_v23  ;;  %v2626_v48 = vld [vmem:[%s3685_s24] ss:$0 sm:$0xff]  ;;  %v783_v59 = vsub.s32 1, %v3366_v58  ;;  %v779_v8 = vsub.s32 0, %v3366_v58  ;;  %vm1055_vm4 = vcmask 113664   ;;  %vm1059_vm5 = vcmask 111616   ;;  %s3688_s24 = scalar_lea.vmem %s3660_s7, %s3235_s23 }
  0x2d   : > { %2829 = vmatprep.subr.bf16.mxu1 %v3132_v7  ;;  %926 = vmatprep.subr.bf16.mxu0 %v2954_v24  ;;  %v2627_v52 = vld [vmem:[%s3686_s27] ss:$0 sm:$0xff]  ;;  %s3135_s25 = smov 96   ;;  %s3136_s15 = smov 64   ;;  %vm1526_vm6 = vcmask 523264   ;;  %vm1529_vm7 = vcmask 785408  }
  0x2e   : > { %700 = vadd.xlane.f32.xlu0 %v694_v4  ;;  %v775_v62 = vld [vmem:[%s3265_s29] sm:$0x7]  ;;  %s3137_s21 = smov 32   ;;  %p2736_p5 = scmp.ne.s32.totalorder %s3229_s22, 11 }
  0x2f   : > { %v784_v1 = vrot.slane %v775_v62, %v783_v59  ;;  %v3391_v22 = vld [vmem:[%s3687_s14] sm:$0xff]  ;;  %s3691_s0 = sld [smem:[#allocation8_spill]] (!%p2736_p5) }
  0x30   : > { %927 = vmatpush1.bf16.msra.mxu0 %v2956_v25  ;;  %2830 = vmatpush3.bf16.msra.mxu1 %v2957_v26  ;;  %v3397_v26 = vld [vmem:[%s3687_s14 + $0x8] sm:$0x3f]  ;;  %s3693_s18 = sld [smem:[#allocation10_spill]] (!%p2736_p5) }
  0x31   : > { %928 = vmatprep.subr.bf16.mxu0 %v2958_v27  ;;  %2831 = vmatprep.subr.bf16.mxu1 %v3132_v7 }
  0x34   : > { %929 = vmatpush1.bf16.msra.mxu0 %v2960_v28  ;;  %2832 = vmatpush3.bf16.msra.mxu1 %v2961_v29 }
  0x35   : > { %930 = vmatprep.subr.bf16.mxu0 %v2962_v30  ;;  %2833 = vmatprep.subr.bf16.mxu1 %v3132_v7 }
  0x38   : > { %931 = vmatpush1.bf16.msra.mxu0 %v2964_v32  ;;  %2834 = vmatpush3.bf16.msra.mxu1 %v2965_v33 }
  0x39   : > { %932 = vmatprep.subr.bf16.mxu0 %v2966_v34  ;;  %2835 = vmatprep.subr.bf16.mxu1 %v3132_v7 }
  0x3c   : > { %933 = vmatpush1.bf16.msra.mxu0 %v2968_v35  ;;  %2836 = vmatpush3.bf16.msra.mxu1 %v2969_v36 }
  0x3d   : > { %934 = vmatprep.subr.bf16.mxu0 %v2970_v37  ;;  %2837 = vmatprep.subr.bf16.mxu1 %v3132_v7 }
  0x40   : > { %935 = vmatpush1.bf16.msra.mxu0 %v2972_v38  ;;  %2838 = vmatpush3.bf16.msra.mxu1 %v2973_v39 }
  0x41   : > { %2843 = vmatprep.subr.bf16.mxu1 %v3132_v7  ;;  %2867 = vmatprep.subr.bf16.mxu0 %v3132_v7 }
  0xb3   : > { %v705_v9 = vpop.xlane.xlu0 %704 }
  0xb4   : > { %v708_v10 = vmul.f32 0.0078125, %v705_v9 }
  0xb6   : > { %v3309_v13 = vsub.f32 %v695_v2, %v708_v10 }
  0xb7   : > { %v701_v11 = vpop.xlane.xlu0 %700 }
  0xb8   : > { %v707_v12 = vmul.f32 0.0078125, %v701_v11  ;;  %v712_v16 = vmul.f32 %v3309_v13, %v3309_v13 }
  0xba   : > { %v3311_v14 = vsub.f32 %v694_v4, %v707_v12  ;;  %v715_v17 = vsel %vm702_vm0, %v712_v16, 0.0  ;;  %v787_v4 = vsub.s32 2, %v3366_v58 }
  0xbc   : > { %v711_v15 = vmul.f32 %v3311_v14, %v3311_v14  ;;  %v788_v11 = vrot.slane %v775_v62, %v787_v4 }
  0xbe   : > { %713 = vadd.xlane.f32.xlu1 %v711_v15 }
  0xc2   : > { %716 = vadd.xlane.f32.xlu1 %v715_v17 }
 0x147   : > { %v714_v40 = vpop.xlane.xlu1 %713 }
 0x148   : > { %v718_v41 = vmul.f32 0.0078125, %v714_v40 }
 0x14a   : > { %v720_v42 = vadd.f32 1e-06, %v718_v41 }
 0x14b   : > { %v717_v43 = vpop.xlane.xlu1 %716 }
 0x14c   : > { %3062 = vrsqrt.f32 %v720_v42  ;;  %v719_v44 = vmul.f32 0.0078125, %v717_v43 }
 0x14e   : > { %v721_v45 = vadd.f32 1e-06, %v719_v44 }
 0x150   : > { %3064 = vrsqrt.f32 %v721_v45 }
 0x159   : > { %v3063_v46 = vpop.eup %3062 }
 0x15a   : > { %v724_v47 = vmul.f32 %v3063_v46, %v3311_v14 }
 0x15c   : > { %v732_v51 = vmul.f32 %v2626_v48, %v724_v47 }
 0x15d   : > { %v3065_v49 = vpop.eup %3064 }
 0x15e   : > { %v725_v50 = vmul.f32 %v3065_v49, %v3309_v13  ;;  %v740_v54 = vadd.f32 %v2627_v52, %v732_v51  ;;  %v780_v13 = vrot.slane %v775_v62, %v779_v8 }
 0x160   : > { %v733_v53 = vmul.f32 %v2626_v48, %v725_v50 }
 0x162   : > { %v741_v55 = vadd.f32 %v2627_v52, %v733_v53 }
 0x164   : > { %v742_v56 = vpack.c.bf16 %v741_v55, %v740_v54 }
 0x166   : > { %953 = vmatmul.mubr.bf16.vlgmr.msra.gmra.mxu0 %v742_v56  ;;  %2840 = vmatmul.mubr.bf16.vlgmr.msra.gmra.mxu1 %v742_v56 }
 0x167   : > { %2845 = vmatprep.mubr.msk.bf16.mxu1 %vm3134_vm1, %v3132_v7  ;;  %2869 = vmatprep.mubr.msk.bf16.mxu0 %vm3134_vm1, %v3132_v7 }
 0x226   : > { %v954_v60 = vpop.f32.mrf.mxu0  ;;  %v997_v61 = vpop.f32.mrf.mxu1 }
 0x227   : > { %v998_v16 = vadd.f32 %v997_v61, %v788_v11  ;;  %v955_v18 = vadd.f32 %v954_v60, %v780_v13 }
 0x228   : > { %v956_v63 = vpop.f32.mrf.mxu0  ;;  %v2841_v0 = vpop.f32.mrf.mxu1 }
 0x229   : > { %v957_v9 = vadd.f32 %v956_v63, %v784_v1 }
 0x22a   : > { %v958_v2 = vpop.f32.mrf.mxu0  ;;  %v1000_v3 = vpop.f32.mrf.mxu1 }
 0x22b   : > { %v1001_v14 = vadd.f32 %v1000_v3, %v788_v11  ;;  %v959_v17 = vadd.f32 %v958_v2, %v780_v13 }
 0x22c   : > { %v960_v5 = vpop.f32.mrf.mxu0  ;;  %v2842_v6 = vpop.f32.mrf.mxu1 }
 0x22d   : > { %v961_v10 = vadd.f32 %v960_v5, %v784_v1  ;;  %v3380_v19 = vpack.c.bf16 %v1001_v14, %v998_v16  ;;  %v1004_v20 = vpack.c.bf16 %v959_v17, %v955_v18 }
 0x22f   : > { %v1005_v12 = vpack.c.bf16 %v961_v10, %v957_v9  ;;  %v1085_v21 = vsel %vm1083_vm3, %v3380_v19, 0 }
 0x231   : > { %v1012_v15 = vsel %vm1007_vm2, %v1005_v12, 0 }
 0x232   : > { %2844 = vmatpush3.bf16.xpose.msra.mxu1 %v1012_v15 }
 0x233   : > { %2849 = vmatprep.subr.bf16.mxu1 %v3132_v7 }
 0x239   : > { %2846 = vmatmul.mubr.msk.bf16.vlgmr.msra.gmra.mxu1 %vm1007_vm2, %v1004_v20 }
 0x23a   : > { %2850 = vmatpush3.bf16.msra.mxu1 %v1085_v21  ;;  %2851 = vmatprep.mubr.msk.bf16.mxu1 %vm3134_vm1, %v3132_v7 }
 0x23b   : > { %2855 = vmatprep.subr.bf16.mxu1 %v3132_v7 }
 0x2f9   : > { %v1048_v23 = vpop.f32.mrf.mxu1 }
 0x2fa   : > { %v1049_v24 = vadd.f32 %v1048_v23, %v3391_v22 }
 0x2fb   : > { %v2847_v25 = vpop.f32.mrf.mxu1 }
 0x2fc   : > { %v1056_v27 = vsel %vm1055_vm4, %v1049_v24, -inf }
 0x2fd   : > { %1057 = vmax.xlane.f32.xlu0 %v1056_v27  ;;  %v1051_v28 = vpop.f32.mrf.mxu1 }
 0x2fe   : > { %v1052_v29 = vadd.f32 %v1051_v28, %v3397_v26 }
 0x2ff   : > { %v2848_v30 = vpop.f32.mrf.mxu1 }
 0x300   : > { %v1060_v32 = vsel %vm1059_vm5, %v1052_v29, -inf }
 0x301   : > { %1061 = vmax.xlane.f32.xlu1 %v1060_v32 }
 0x386   : > { %v1058_v33 = vpop.xlane.xlu0 %1057 }
 0x387   : > { %v1063_v34 = vsub.f32 %v1049_v24, %v1058_v33 }
 0x389   : > { %v1065_v35 = vmul.f32 1.442695, %v1063_v34 }
 0x38a   : > { %v1062_v36 = vpop.xlane.xlu1 %1061 }
 0x38b   : > { %3066 = vpow2.f32 %v1065_v35  ;;  %v1064_v37 = vsub.f32 %v1052_v29, %v1062_v36 }
 0x38d   : > { %v1067_v38 = vmul.f32 1.442695, %v1064_v37 }
 0x38f   : > { %3068 = vpow2.f32 %v1067_v38 }
 0x398   : > { %v3067_v39 = vpop.eup %3066 }
 0x399   : > { %v1069_v40 = vsel %vm1055_vm4, %v3067_v39, 0.0 }
 0x39a   : > { %1070 = vadd.xlane.f32.xlu0 %v1069_v40 }
 0x39c   : > { %v3069_v41 = vpop.eup %3068 }
 0x39d   : > { %v1072_v42 = vsel %vm1059_vm5, %v3069_v41, 0.0 }
 0x39e   : > { %1073 = vadd.xlane.f32.xlu1 %v1072_v42 }
 0x3af   : > { %1129 = vrot.lane.b32.xlu1 %v1004_v20, %s3135_s25 }
 0x3b0   : > { %1132 = vrot.lane.b32.xlu0 %v1005_v12, %s3135_s25 }
 0x3b3   : > { %1256 = vrot.lane.b32.xlu1 %v1005_v12, %s3136_s15 }
 0x3b4   : > { %1379 = vrot.lane.b32.xlu0 %v1005_v12, %s3137_s21 }
 0x3b7   : > { %1254 = vrot.lane.b32.xlu1 %v1004_v20, %s3136_s15 }
 0x3bb   : > { %1377 = vrot.lane.b32.xlu1 %v1004_v20, %s3137_s21 }
 0x423   : > { %v1071_v43 = vpop.xlane.xlu0 %1070 }
 0x424   : > { %3070 = vrcp.f32 %v1071_v43 }
 0x427   : > { %v1074_v44 = vpop.xlane.xlu1 %1073  ;;  %v1133_v46 = vpop.permute.xlu0 %1132 }
 0x428   : > { %3072 = vrcp.f32 %v1074_v44  ;;  %v1138_v57 = vsel %vm1007_vm2, %v1133_v46, 0 }
 0x42b   : > { %v1130_v45 = vpop.permute.xlu1 %1129  ;;  %v1380_v51 = vpop.permute.xlu0 %1379 }
 0x42c   : > { %v1385_v55 = vsel %vm1007_vm2, %v1380_v51, 0 }
 0x42f   : > { %v1257_v47 = vpop.permute.xlu1 %1256 }
 0x430   : > { %v1262_v48 = vsel %vm1007_vm2, %v1257_v47, 0 }
 0x431   : > { %2868 = vmatpush3.bf16.xpose.msra.mxu0 %v1262_v48  ;;  %v3071_v49 = vpop.eup %3070 }
 0x432   : > { %2879 = vmatprep.subr.bf16.mxu0 %v3132_v7  ;;  %v1077_v52 = vmul.f32 %v3071_v49, %v3067_v39 }
 0x433   : > { %v1255_v54 = vpop.permute.xlu1 %1254 }
 0x435   : > { %v3073_v50 = vpop.eup %3072 }
 0x436   : > { %v1078_v53 = vmul.f32 %v3073_v50, %v3069_v41 }
 0x437   : > { %v1378_v60 = vpop.permute.xlu1 %1377 }
 0x438   : > { %2870 = vmatmul.mubr.msk.bf16.vlgmr.msra.gmra.mxu0 %vm1007_vm2, %v1255_v54  ;;  %v1079_v56 = vpack.c.bf16 %v1078_v53, %v1077_v52 }
 0x439   : > { %2880 = vmatpush3.bf16.xpose.msra.mxu0 %v1385_v55  ;;  %2881 = vmatprep.mubr.msk.bf16.mxu0 %vm3134_vm1, %v3132_v7 }
 0x43a   : > { %2852 = vmatmul.mubr.msk.bf16.vlgmr.msra.gmra.mxu1 %vm1055_vm4, %v1079_v56  ;;  %2891 = vmatprep.subr.bf16.mxu0 %v3132_v7 }
 0x43b   : > { %2856 = vmatpush3.bf16.xpose.msra.mxu1 %v1138_v57  ;;  %2857 = vmatprep.mubr.msk.bf16.mxu1 %vm3134_vm1, %v3132_v7 }
 0x43c   : > { %2861 = vmatprep.subr.bf16.mxu1 %v3132_v7 }
 0x440   : > { %2882 = vmatmul.mubr.msk.bf16.vlgmr.msra.gmra.mxu0 %vm1007_vm2, %v1378_v60 }
 0x441   : > { %2907 = vmatprep.mubr.msk.bf16.mxu0 %vm3134_vm1, %v3132_v7 }
 0x442   : > { %2858 = vmatmul.mubr.msk.bf16.vlgmr.msra.gmra.mxu1 %vm1007_vm2, %v1130_v45 }
 0x443   : > { %2863 = vmatprep.mubr.msk.bf16.mxu1 %vm3134_vm1, %v3132_v7 }
 0x4f8   : > { %v1298_v61 = vpop.f32.mrf.mxu0 }
 0x4f9   : > { %v1299_v14 = vadd.f32 %v1298_v61, %v3391_v22 }
 0x4fa   : > { %v3428_v62 = vpop.f32.mrf.mxu1  ;;  %v2871_v63 = vpop.f32.mrf.mxu0 }
 0x4fb   : > { %v1305_v24 = vsel %vm1055_vm4, %v1299_v14, -inf }
 0x4fc   : > { %v2853_v0 = vpop.f32.mrf.mxu1  ;;  %v1301_v1 = vpop.f32.mrf.mxu0 }
 0x4fd   : > { %v1302_v21 = vadd.f32 %v1301_v1, %v3397_v26 }
 0x4fe   : > { %v3430_v2 = vpop.f32.mrf.mxu1  ;;  %v2872_v3 = vpop.f32.mrf.mxu0 }
 0x4ff   : > { %v1308_v28 = vsel %vm1059_vm5, %v1302_v21, -inf }
 0x500   : > { %v2854_v5 = vpop.f32.mrf.mxu1  ;;  %v1421_v6 = vpop.f32.mrf.mxu0 }
 0x501   : > { %v1422_v27 = vadd.f32 %v1421_v6, %v3391_v22 }
 0x502   : > { %v1174_v9 = vpop.f32.mrf.mxu1  ;;  %v2883_v10 = vpop.f32.mrf.mxu0 }
 0x503   : > { %v1175_v11 = vadd.f32 %v1174_v9, %v3391_v22  ;;  %v1428_v30 = vsel %vm1055_vm4, %v1422_v27, -inf }
 0x504   : > { %v2859_v12 = vpop.f32.mrf.mxu1  ;;  %v1424_v13 = vpop.f32.mrf.mxu0 }
 0x505   : > { %v1181_v15 = vsel %vm1055_vm4, %v1175_v11, -inf  ;;  %v1425_v23 = vadd.f32 %v1424_v13, %v3397_v26 }
 0x506   : > { %v2884_v16 = vpop.f32.mrf.mxu0  ;;  %1182 = vmax.xlane.f32.xlu0 %v1181_v15  ;;  %v1177_v17 = vpop.f32.mrf.mxu1 }
 0x507   : > { %v1178_v18 = vadd.f32 %v1177_v17, %v3397_v26  ;;  %v1431_v29 = vsel %vm1059_vm5, %v1425_v23, -inf }
 0x508   : > { %v2860_v20 = vpop.f32.mrf.mxu1 }
 0x509   : > { %v1184_v25 = vsel %vm1059_vm5, %v1178_v18, -inf }
 0x50a   : > { %1306 = vmax.xlane.f32.xlu0 %v1305_v24  ;;  %1185 = vmax.xlane.f32.xlu1 %v1184_v25 }
 0x50e   : > { %1309 = vmax.xlane.f32.xlu0 %v1308_v28  ;;  %1432 = vmax.xlane.f32.xlu1 %v1431_v29 }
 0x512   : > { %1429 = vmax.xlane.f32.xlu0 %v1428_v30 }
 0x58f   : > { %v1183_v32 = vpop.xlane.xlu0 %1182 }
 0x590   : > { %v1187_v22 = vsub.f32 %v1175_v11, %v1183_v32 }
 0x592   : > { %v1189_v45 = vmul.f32 1.442695, %v1187_v22 }
 0x593   : > { %v1307_v33 = vpop.xlane.xlu0 %1306  ;;  %v1186_v26 = vpop.xlane.xlu1 %1185 }
 0x594   : > { %v1311_v34 = vsub.f32 %v1299_v14, %v1307_v33  ;;  %v1188_v40 = vsub.f32 %v1178_v18, %v1186_v26  ;;  %v2974_v33 = vld [vmem:[%s3251_s20 + $0x38] sm:$0xff]   ;;  %v2975_v26 = vld [vmem:[%s3251_s20 + $0x30] sm:$0xff]  }
 0x595   : > { %2892 = vmatpush3.bf16.msra.mxu0 %v2974_v33  ;;  %v2984_v33 = vld [vmem:[%s3279_s4 + $0xe4] ss:$16 sps:$4 sm:$0xff]  }
 0x596   : > { %v1313_v35 = vmul.f32 1.442695, %v1311_v34  ;;  %v1191_v46 = vmul.f32 1.442695, %v1188_v40  ;;  %2893 = vmatprep.subr.bf16.mxu0 %v3132_v7  ;;  %v2976_v34 = vld [vmem:[%s3251_s20 + $0x28] sm:$0xff]  }
 0x597   : > { %v1310_v36 = vpop.xlane.xlu0 %1309  ;;  %v1433_v37 = vpop.xlane.xlu1 %1432 }
 0x598   : > { %3074 = vpow2.f32 %v1313_v35  ;;  %v1312_v38 = vsub.f32 %v1302_v21, %v1310_v36  ;;  %v1435_v39 = vsub.f32 %v1425_v23, %v1433_v37  ;;  %v2977_v35 = vld [vmem:[%s3251_s20 + $0x20] sm:$0xff]   ;;  %v2978_v36 = vld [vmem:[%s3251_s20 + $0x18] sm:$0xff]  }
 0x599   : > { %2894 = vmatpush3.bf16.msra.mxu0 %v2975_v26  ;;  %v2987_v26 = vld [vmem:[%s3279_s4 + $0xec] ss:$16 sps:$4 sm:$0xff]  }
 0x59a   : > { %v1315_v41 = vmul.f32 1.442695, %v1312_v38  ;;  %v1438_v42 = vmul.f32 1.442695, %v1435_v39  ;;  %2895 = vmatprep.subr.bf16.mxu0 %v3132_v7  ;;  %v2979_v39 = vld [vmem:[%s3251_s20 + $0x10] sm:$0xff]  }
 0x59b   : > { %v1430_v43 = vpop.xlane.xlu0 %1429 }
 0x59c   : > { %3076 = vpow2.f32 %v1315_v41  ;;  %v1434_v44 = vsub.f32 %v1422_v27, %v1430_v43  ;;  %v2980_v41 = vld [vmem:[%s3251_s20 + $0x8] sm:$0xff]  }
 0x59d   : > { %3078 = vpow2.f32 %v1438_v42  ;;  %2896 = vmatpush3.bf16.msra.mxu0 %v2976_v34  ;;  %v2982_v34 = vld [vmem:[%s3279_s4 + $0xe0] ss:$16 sps:$4 sm:$0xff]  }
 0x59e   : > { %v1436_v47 = vmul.f32 1.442695, %v1434_v44  ;;  %2897 = vmatprep.subr.bf16.mxu0 %v3132_v7 }
 0x5a0   : > { %3080 = vpow2.f32 %v1436_v47 }
 0x5a1   : > { %3082 = vpow2.f32 %v1189_v45  ;;  %2898 = vmatpush3.bf16.msra.mxu0 %v2977_v35  ;;  %v2981_v45 = vld [vmem:[%s3251_s20] sm:$0xff]   ;;  %v2985_v35 = vld [vmem:[%s3279_s4 + $0xe8] ss:$16 sps:$4 sm:$0xff]  }
 0x5a2   : > { %3084 = vpow2.f32 %v1191_v46  ;;  %2899 = vmatprep.subr.bf16.mxu0 %v3132_v7 }
 0x5a5   : > { %v3075_v48 = vpop.eup %3074  ;;  %2900 = vmatpush3.bf16.msra.mxu0 %v2978_v36  ;;  %v2990_v36 = vld [vmem:[%s3279_s4 + $0xc4] ss:$16 sps:$4 sm:$0xff]  }
 0x5a6   : > { %v1317_v49 = vsel %vm1055_vm4, %v3075_v48, 0.0  ;;  %2901 = vmatprep.subr.bf16.mxu0 %v3132_v7 }
 0x5a7   : > { %1318 = vadd.xlane.f32.xlu0 %v1317_v49 }
 0x5a9   : > { %v3077_v50 = vpop.eup %3076  ;;  %2902 = vmatpush3.bf16.msra.mxu0 %v2979_v39  ;;  %v2991_v39 = vld [vmem:[%s3279_s4 + $0xc8] ss:$16 sps:$4 sm:$0xff]  }
 0x5aa   : > { %v1320_v51 = vsel %vm1059_vm5, %v3077_v50, 0.0  ;;  %v3079_v52 = vpop.eup %3078  ;;  %2903 = vmatprep.subr.bf16.mxu0 %v3132_v7 }
 0x5ab   : > { %1321 = vadd.xlane.f32.xlu1 %v1320_v51  ;;  %v1443_v56 = vsel %vm1059_vm5, %v3079_v52, 0.0 }
 0x5ad   : > { %v3081_v53 = vpop.eup %3080  ;;  %2904 = vmatpush3.bf16.msra.mxu0 %v2980_v41  ;;  %v2994_v41 = vld [vmem:[%s3279_s4 + $0xa0] ss:$16 sps:$4 sm:$0xff]  }
 0x5ae   : > { %v3083_v54 = vpop.eup %3082  ;;  %v1440_v55 = vsel %vm1055_vm4, %v3081_v53, 0.0  ;;  %2905 = vmatprep.subr.bf16.mxu0 %v3132_v7 }
 0x5af   : > { %v3085_v57 = vpop.eup %3084  ;;  %1441 = vadd.xlane.f32.xlu0 %v1440_v55  ;;  %1444 = vadd.xlane.f32.xlu1 %v1443_v56  ;;  %v1193_v60 = vsel %vm1055_vm4, %v3083_v54, 0.0 }
 0x5b0   : > { %v1196_v61 = vsel %vm1059_vm5, %v3085_v57, 0.0 }
 0x5b1   : > { %2906 = vmatpush3.bf16.msra.mxu0 %v2981_v45  ;;  %v3003_v45 = vld [vmem:[%s3279_s4 + $0x88] ss:$16 sps:$4 sm:$0xff]  }
 0x5b2   : > { %1949 = vmatprep.subr.bf16.mxu0 %v2987_v26  ;;  %v3040_v26 = vld [vmem:[%s3290_s1 + $0x28] sm:$0xff]  }
 0x5b3   : > { %1194 = vadd.xlane.f32.xlu0 %v1193_v60  ;;  %1197 = vadd.xlane.f32.xlu1 %v1196_v61 }
 0x5c4   : > { %1328 = vrot.lane.b32.xlu1 %v3380_v19, %s3136_s15 }
 0x5c8   : > { %1451 = vrot.lane.b32.xlu1 %v3380_v19, %s3137_s21 }
 0x5c9   : > { %1205 = vrot.lane.b32.xlu0 %v3380_v19, %s3135_s25 }
 0x630   : > { %v1319_v63 = vpop.xlane.xlu0 %1318 }
 0x634   : > { %v1322_v0 = vpop.xlane.xlu1 %1321 }
 0x638   : > { %v1442_v1 = vpop.xlane.xlu0 %1441  ;;  %v1445_v3 = vpop.xlane.xlu1 %1444 }
 0x63c   : > { %v1195_v5 = vpop.xlane.xlu0 %1194  ;;  %v1198_v6 = vpop.xlane.xlu1 %1197 }
 0x63d   : > { %3086 = vrcp.f32 %v1195_v5 }
 0x63e   : > { %3088 = vrcp.f32 %v1198_v6 }
 0x63f   : > { %3090 = vrcp.f32 %v1322_v0 }
 0x640   : > { %v1206_v9 = vpop.permute.xlu0 %1205  ;;  %3092 = vrcp.f32 %v1319_v63  ;;  %v1329_v14 = vpop.permute.xlu1 %1328 }
 0x641   : > { %v1211_v10 = vsel %vm1083_vm3, %v1206_v9, 0  ;;  %3094 = vrcp.f32 %v1442_v1  ;;  %v1334_v17 = vsel %vm1083_vm3, %v1329_v14, 0 }
 0x642   : > { %2862 = vmatpush3.bf16.msra.mxu1 %v1211_v10  ;;  %3096 = vrcp.f32 %v1445_v3 }
 0x643   : > { %2873 = vmatprep.subr.bf16.mxu1 %v3132_v7 }
 0x644   : > { %v1452_v23 = vpop.permute.xlu1 %1451 }
 0x645   : > { %v1457_v28 = vsel %vm1083_vm3, %v1452_v23, 0 }
 0x64a   : > { %v3087_v11 = vpop.eup %3086 }
 0x64b   : > { %v3089_v19 = vpop.eup %3088  ;;  %v1201_v12 = vmul.f32 %v3087_v11, %v3083_v54 }
 0x64c   : > { %v1202_v13 = vmul.f32 %v3089_v19, %v3085_v57  ;;  %v3091_v16 = vpop.eup %3090 }
 0x64d   : > { %v3093_v18 = vpop.eup %3092  ;;  %v1326_v20 = vmul.f32 %v3091_v16, %v3077_v50  ;;  %v3119_v16 = vld [vmem:[#allocation2 + $0x8] sm:$0x3f] }
 0x64e   : > { %v1203_v15 = vpack.c.bf16 %v1202_v13, %v1201_v12  ;;  %v1325_v21 = vmul.f32 %v3093_v18, %v3075_v48  ;;  %v3095_v24 = vpop.eup %3094  ;;  %v2668_v12 = vld [vmem:[%s3688_s24] ss:$0 sm:$0xff] }
 0x64f   : > { %v3097_v27 = vpop.eup %3096  ;;  %v1448_v29 = vmul.f32 %v3095_v24, %v3081_v53 }
 0x650   : > { %2864 = vmatmul.mubr.msk.bf16.vlgmr.msra.gmra.mxu1 %vm1055_vm4, %v1203_v15  ;;  %v1327_v25 = vpack.c.bf16 %v1326_v20, %v1325_v21  ;;  %v1449_v30 = vmul.f32 %v3097_v27, %v3079_v52 }
 0x651   : > { %2874 = vmatpush3.bf16.msra.mxu1 %v1334_v17  ;;  %2875 = vmatprep.mubr.msk.bf16.mxu1 %vm3134_vm1, %v3132_v7 }
 0x652   : > { %2885 = vmatprep.subr.bf16.mxu1 %v3132_v7  ;;  %v1450_v32 = vpack.c.bf16 %v1449_v30, %v1448_v29 }
 0x658   : > { %2876 = vmatmul.mubr.msk.bf16.vlgmr.msra.gmra.mxu1 %vm1055_vm4, %v1327_v25 }
 0x659   : > { %2886 = vmatpush3.bf16.msra.mxu1 %v1457_v28  ;;  %2887 = vmatprep.mubr.msk.bf16.mxu1 %vm3134_vm1, %v3132_v7 }
 0x65a   : > { %1906 = vmatprep.subr.bf16.mxu1 %v2984_v33  ;;  %v3039_v33 = vld [vmem:[%s3290_s1 + $0xe8] sm:$0xff]  }
 0x660   : > { %2888 = vmatmul.mubr.msk.bf16.vlgmr.msra.gmra.mxu1 %vm1055_vm4, %v1450_v32 }
 0x661   : > { %1938 = vmatprep.mubr.bf16.mxu1 %v3133_v31  ;;  %1907 = vmatpush1.bf16.msra.mxu1 %v2982_v34  ;;  %v3041_v34 = vld [vmem:[%s3290_s1 + $0xa8] sm:$0xff]  }
 0x662   : > { %1908 = vmatprep.subr.bf16.mxu1 %v2990_v36  ;;  %v3043_v36 = vld [vmem:[%s3290_s1 + $0xe0] sm:$0xff]  }
 0x710   : > { %v1247_v37 = vpop.f32.mrf.mxu1 }
 0x712   : > { %v2865_v38 = vpop.f32.mrf.mxu1 }
 0x713   : > { %v2988_v38 = vld [vmem:[%s3279_s4 + $0xc0] ss:$16 sps:$4 sm:$0xff]  }
 0x714   : > { %v1250_v22 = vpop.f32.mrf.mxu1  ;;  %1909 = vmatpush1.bf16.msra.mxu1 %v2988_v38  ;;  %v3045_v38 = vld [vmem:[%s3290_s1 + $0xa0] sm:$0xff]  }
 0x715   : > { %v2927_v40 = vpack.i.bf16 %v1250_v22, %v1247_v37  ;;  %v2993_v37 = vld [vmem:[%s3279_s4 + $0xcc] ss:$16 sps:$4 sm:$0xff]   ;;  %v2996_v22 = vld [vmem:[%s3279_s4 + $0xa4] ss:$16 sps:$4 sm:$0xff]  }
 0x716   : > { %v2866_v42 = vpop.f32.mrf.mxu1  ;;  %1910 = vmatprep.subr.bf16.mxu1 %v2996_v22  ;;  %v3047_v22 = vld [vmem:[%s3290_s1 + $0xd8] sm:$0xff]  }
 0x717   : > { %2928 = vrot.lane.b32.xlu1 %v2927_v40, %s3137_s21  ;;  %v2999_v40 = vld [vmem:[%s3279_s4 + $0xac] ss:$16 sps:$4 sm:$0xff]   ;;  %v2997_v42 = vld [vmem:[%s3279_s4 + $0xa8] ss:$16 sps:$4 sm:$0xff]  }
 0x718   : > { %v1370_v43 = vpop.f32.mrf.mxu1  ;;  %1911 = vmatpush1.bf16.msra.mxu1 %v2994_v41  ;;  %v3049_v41 = vld [vmem:[%s3290_s1 + $0x98] sm:$0xff]  }
 0x71a   : > { %v2877_v44 = vpop.f32.mrf.mxu1 }
 0x71b   : > { %v3002_v44 = vld [vmem:[%s3279_s4 + $0x84] ss:$16 sps:$4 sm:$0xff]  }
 0x71c   : > { %v1373_v46 = vpop.f32.mrf.mxu1  ;;  %1912 = vmatprep.subr.bf16.mxu1 %v3002_v44  ;;  %v3052_v44 = vld [vmem:[%s3290_s1 + $0x10] sm:$0xff]  }
 0x71d   : > { %v2932_v47 = vpack.i.bf16 %v1373_v46, %v1370_v43  ;;  %v3000_v43 = vld [vmem:[%s3279_s4 + $0x80] ss:$16 sps:$4 sm:$0xff]   ;;  %v3005_v46 = vld [vmem:[%s3279_s4 + $0x8c] ss:$16 sps:$4 sm:$0xff]  }
 0x71e   : > { %v2878_v48 = vpop.f32.mrf.mxu1  ;;  %1913 = vmatpush1.bf16.msra.mxu1 %v3000_v43  ;;  %v3051_v43 = vld [vmem:[%s3290_s1 + $0xd0] sm:$0xff]  }
 0x71f   : > { %2933 = vrot.lane.b32.xlu0 %v2932_v47, %s3136_s15  ;;  %v3008_v47 = vld [vmem:[%s3279_s4 + $0x64] ss:$16 sps:$4 sm:$0xff]   ;;  %v3011_v48 = vld [vmem:[%s3279_s4 + $0x6c] ss:$16 sps:$4 sm:$0xff]   ;;  %s3692_s15 = sld [smem:[#allocation9_spill]] (!%p2736_p5) }
 0x720   : > { %v1493_v49 = vpop.f32.mrf.mxu1  ;;  %1914 = vmatprep.subr.bf16.mxu1 %v3008_v47  ;;  %v3055_v47 = vld [vmem:[%s3290_s1 + $0xc8] sm:$0xff]  }
 0x722   : > { %v2889_v50 = vpop.f32.mrf.mxu1 }
 0x723   : > { %v3009_v50 = vld [vmem:[%s3279_s4 + $0x68] ss:$16 sps:$4 sm:$0xff]  }
 0x724   : > { %v1496_v51 = vpop.f32.mrf.mxu1 }
 0x725   : > { %v2937_v52 = vpack.i.bf16 %v1496_v51, %v1493_v49  ;;  %v3006_v49 = vld [vmem:[%s3279_s4 + $0x60] ss:$16 sps:$4 sm:$0xff]   ;;  %v3014_v51 = vld [vmem:[%s3279_s4 + $0x44] ss:$16 sps:$4 sm:$0xff]  }
 0x726   : > { %v2890_v53 = vpop.f32.mrf.mxu1  ;;  %1915 = vmatpush1.bf16.msra.mxu1 %v3006_v49  ;;  %v3057_v49 = vld [vmem:[%s3290_s1 + $0x88] sm:$0xff]  }
 0x727   : > { %2938 = vrot.lane.b32.xlu1 %v2937_v52, %s3135_s25  ;;  %v3017_v52 = vld [vmem:[%s3279_s4 + $0x4c] ss:$16 sps:$4 sm:$0xff]   ;;  %v3012_v53 = vld [vmem:[%s3279_s4 + $0x40] ss:$16 sps:$4 sm:$0xff]   ;;  %1916 = vmatprep.subr.bf16.mxu1 %v3014_v51 }
 0x728   : > { %v3059_v51 = vld [vmem:[%s3290_s1 + $0xc0] sm:$0xff]  }
 0x72a   : > { %1917 = vmatpush1.bf16.msra.mxu1 %v3012_v53  ;;  %v3061_v53 = vld [vmem:[%s3290_s1 + $0x80] sm:$0xff]  }
 0x789   : > { %v2929_v54 = vpop.permute.xlu1 %2928 }
 0x78a   : > { %v2931_v56 = vunpack.i.h.bf16 %v2929_v54  ;;  %v2930_v57 = vunpack.i.l.bf16 %v2929_v54  ;;  %v3015_v54 = vld [vmem:[%s3279_s4 + $0x48] ss:$16 sps:$4 sm:$0xff]  }
 0x78c   : > { %v1525_v63 = vsel %vm1007_vm2, %v3430_v2, %v2931_v56  ;;  %v1524_v0 = vsel %vm1007_vm2, %v3428_v62, %v2930_v57  ;;  %v3118_v2 = vld [vmem:[#allocation2] sm:$0xff]  ;;  %v3023_v56 = vld [vmem:[%s3279_s4 + $0x2c] ss:$16 sps:$4 sm:$0xff]  }
 0x78d   : > { %v3018_v57 = vld [vmem:[%s3279_s4 + $0x20] ss:$16 sps:$4 sm:$0xff]  }
 0x791   : > { %v2934_v55 = vpop.permute.xlu0 %2933 }
 0x792   : > { %v2936_v60 = vunpack.i.h.bf16 %v2934_v55  ;;  %v2935_v7 = vunpack.i.l.bf16 %v2934_v55  ;;  %v3020_v55 = vld [vmem:[%s3279_s4 + $0x24] ss:$16 sps:$4 sm:$0xff]  }
 0x793   : > { %1918 = vmatprep.subr.bf16.mxu1 %v3020_v55  ;;  %v1740_v55 = vsub.s32 3, %v3366_v58 }
 0x794   : > { %v1528_v5 = vsel %vm1526_vm6, %v1525_v63, %v2936_v60  ;;  %v1527_v6 = vsel %vm1526_vm6, %v1524_v0, %v2935_v7  ;;  %v3021_v60 = vld [vmem:[%s3279_s4 + $0x28] ss:$16 sps:$4 sm:$0xff]   ;;  %v3026_v7 = vld [vmem:[%s3279_s4 + $0x4] ss:$16 sps:$4 sm:$0xff]   ;;  %1919 = vmatpush1.bf16.msra.mxu1 %v3018_v57  ;;  %v3024_v63 = vld [vmem:[%s3279_s4] ss:$16 sps:$4 sm:$0xff]  }
 0x795   : > { %v3027_v0 = vld [vmem:[%s3279_s4 + $0x8] ss:$16 sps:$4 sm:$0xff]   ;;  %1920 = vmatprep.subr.bf16.mxu1 %v3026_v7 }
 0x798   : > { %1921 = vmatpush1.bf16.msra.mxu1 %v3024_v63 }
 0x799   : > { %v2939_v61 = vpop.permute.xlu1 %2938 }
 0x79a   : > { %v2941_v1 = vunpack.i.h.bf16 %v2939_v61  ;;  %v2940_v3 = vunpack.i.l.bf16 %v2939_v61  ;;  %v3029_v61 = vld [vmem:[%s3279_s4 + $0xc] ss:$16 sps:$4 sm:$0xff]  }
 0x79c   : > { %v1531_v9 = vsel %vm1529_vm7, %v1528_v5, %v2941_v1  ;;  %v1530_v10 = vsel %vm1529_vm7, %v1527_v6, %v2940_v3 }
 0x79d   : > { %v1532_v11 = vpack.c.bf16 %v1531_v9, %v1530_v10 }
 0x79f   : > { %2908 = vmatmul.mubr.bf16.vlgmr.msra.gmra.mxu0 %v1532_v11 }
 0x7a0   : > { %1981 = vmatprep.mubr.bf16.mxu0 %v3133_v31  ;;  %1950 = vmatpush1.bf16.msra.mxu0 %v2985_v35  ;;  %v3042_v35 = vld [vmem:[%s3290_s1 + $0x60] sm:$0xff]  }
 0x7a1   : > { %1951 = vmatprep.subr.bf16.mxu0 %v2993_v37  ;;  %v3044_v37 = vld [vmem:[%s3290_s1 + $0x20] sm:$0xff]  }
 0x7a4   : > { %1952 = vmatpush1.bf16.msra.mxu0 %v2991_v39  ;;  %v3046_v39 = vld [vmem:[%s3290_s1 + $0x58] sm:$0xff]  }
 0x7a5   : > { %1953 = vmatprep.subr.bf16.mxu0 %v2999_v40  ;;  %v3048_v40 = vld [vmem:[%s3290_s1 + $0x18] sm:$0xff]  }
 0x7a8   : > { %1954 = vmatpush1.bf16.msra.mxu0 %v2997_v42  ;;  %v3050_v42 = vld [vmem:[%s3290_s1 + $0x50] sm:$0xff]  }
 0x7a9   : > { %1955 = vmatprep.subr.bf16.mxu0 %v3005_v46  ;;  %v3054_v46 = vld [vmem:[%s3290_s1 + $0x48] sm:$0xff]  }
 0x7ac   : > { %1956 = vmatpush1.bf16.msra.mxu0 %v3003_v45  ;;  %v3053_v45 = vld [vmem:[%s3290_s1 + $0x90] sm:$0xff]  }
 0x7ad   : > { %1957 = vmatprep.subr.bf16.mxu0 %v3011_v48  ;;  %v3056_v48 = vld [vmem:[%s3290_s1 + $0x8] sm:$0xff]  }
 0x7b0   : > { %1958 = vmatpush1.bf16.msra.mxu0 %v3009_v50  ;;  %v3058_v50 = vld [vmem:[%s3290_s1 + $0x40] sm:$0xff]  }
 0x7b1   : > { %1959 = vmatprep.subr.bf16.mxu0 %v3017_v52  ;;  %v3060_v52 = vld [vmem:[%s3290_s1] sm:$0xff]  }
 0x7b4   : > { %1960 = vmatpush1.bf16.msra.mxu0 %v3015_v54  ;;  %v1724_v54 = vld [vmem:[%s3285_s17] sm:$0xf] }
 0x7b5   : > { %1961 = vmatprep.subr.bf16.mxu0 %v3023_v56  ;;  %v1729_v56 = vrot.slane %v1724_v54, %v779_v8  ;;  %v1737_v57 = vrot.slane %v1724_v54, %v787_v4  ;;  %v1741_v7 = vrot.slane %v1724_v54, %v1740_v55 }
 0x7b8   : > { %1962 = vmatpush1.bf16.msra.mxu0 %v3021_v60  ;;  %v1733_v60 = vrot.slane %v1724_v54, %v783_v59 }
 0x7b9   : > { %1963 = vmatprep.subr.bf16.mxu0 %v3029_v61 }
 0x7bc   : > { %1964 = vmatpush1.bf16.msra.mxu0 %v3027_v0 }
 0x85f   : > { %v1631_v19 = vpop.f32.mrf.mxu0 }
 0x860   : > { %v1638_v13 = vadd.f32 %v3118_v2, %v1631_v19 }
 0x861   : > { %v2909_v14 = vpop.f32.mrf.mxu0 }
 0x862   : > { %v3497_v62 = vadd.f32 %v2668_v12, %v1638_v13 }
 0x863   : > { %v1634_v15 = vpop.f32.mrf.mxu0 }
 0x864   : > { %v1639_v17 = vadd.f32 %v3119_v16, %v1634_v15  ;;  %1651 = vadd.xlane.f32.xlu1 %v3497_v62  ;;  %v2670_v15 = vld [vmem:[%s3690_s28] ss:$0 sm:$0xff] }
 0x865   : > { %v2910_v18 = vpop.f32.mrf.mxu0 }
 0x866   : > { %v3500_v31 = vadd.f32 %v2668_v12, %v1639_v17  ;;  %v2669_v12 = vld [vmem:[%s3689_s26] ss:$0 sm:$0xff] }
 0x868   : > { %v1653_v20 = vsel %vm702_vm0, %v3500_v31, 0.0 }
 0x869   : > { %1654 = vadd.xlane.f32.xlu0 %v1653_v20 }
 0x8ed   : > { %v1652_v21 = vpop.xlane.xlu1 %1651 }
 0x8ee   : > { %v1656_v23 = vmul.f32 0.0078125, %v1652_v21  ;;  %v3030_v21 = vld [vmem:[%s3290_s1 + $0x78] sm:$0xff]  }
 0x8ef   : > { %2779 = vmatprep.subr.bf16.mxu1 %v3030_v21 }
 0x8f0   : > { %v3505_v24 = vsub.f32 %v3497_v62, %v1656_v23  ;;  %v3031_v23 = vld [vmem:[%s3290_s1 + $0xf8] sm:$0xff]  }
 0x8f1   : > { %2801 = vmatprep.subr.bf16.mxu0 %v3031_v23 }
 0x8f2   : > { %v1655_v25 = vpop.xlane.xlu0 %1654  ;;  %v1660_v27 = vmul.f32 %v3505_v24, %v3505_v24 }
 0x8f3   : > { %v1657_v28 = vmul.f32 0.0078125, %v1655_v25  ;;  %v3033_v25 = vld [vmem:[%s3290_s1 + $0xb8] sm:$0xff]  }
 0x8f4   : > { %1662 = vadd.xlane.f32.xlu0 %v1660_v27  ;;  %v3034_v27 = vld [vmem:[%s3290_s1 + $0x70] sm:$0xff]  }
 0x8f5   : > { %v3510_v29 = vsub.f32 %v3500_v31, %v1657_v28  ;;  %v3035_v28 = vld [vmem:[%s3290_s1 + $0xf0] sm:$0xff]  }
 0x8f7   : > { %v1661_v30 = vmul.f32 %v3510_v29, %v3510_v29 }
 0x8f9   : > { %v1664_v32 = vsel %vm702_vm0, %v1661_v30, 0.0  ;;  %v3037_v30 = vld [vmem:[%s3290_s1 + $0xb0] sm:$0xff]  }
 0x8fa   : > { %1665 = vadd.xlane.f32.xlu0 %v1664_v32  ;;  %v3038_v32 = vld [vmem:[%s3290_s1 + $0x68] sm:$0xff]  }
 0x97d   : > { %v1663_v1 = vpop.xlane.xlu0 %1662 }
 0x97e   : > { %v1667_v3 = vmul.f32 0.0078125, %v1663_v1 }
 0x980   : > { %v1669_v5 = vadd.f32 1e-06, %v1667_v3 }
 0x982   : > { %3098 = vrsqrt.f32 %v1669_v5 }
 0x983   : > { %v1666_v6 = vpop.xlane.xlu0 %1665 }
 0x984   : > { %v1668_v9 = vmul.f32 0.0078125, %v1666_v6 }
 0x986   : > { %v1670_v10 = vadd.f32 1e-06, %v1668_v9 }
 0x988   : > { %3100 = vrsqrt.f32 %v1670_v10 }
 0x98f   : > { %v3099_v11 = vpop.eup %3098 }
 0x990   : > { %v1673_v19 = vmul.f32 %v3099_v11, %v3505_v24  ;;  %v3032_v24 = vld [vmem:[%s3290_s1 + $0x38] sm:$0xff]  }
 0x992   : > { %v1681_v14 = vmul.f32 %v2669_v12, %v1673_v19 }
 0x994   : > { %v1689_v17 = vadd.f32 %v2670_v15, %v1681_v14 }
 0x995   : > { %v3101_v2 = vpop.eup %3100 }
 0x996   : > { %v1674_v13 = vmul.f32 %v3101_v2, %v3510_v29  ;;  %v3036_v29 = vld [vmem:[%s3290_s1 + $0x30] sm:$0xff]  }
 0x998   : > { %v1682_v16 = vmul.f32 %v2669_v12, %v1674_v13 }
 0x99a   : > { %v1690_v18 = vadd.f32 %v2670_v15, %v1682_v16 }
 0x99c   : > { %v1691_v20 = vpack.c.bf16 %v1690_v18, %v1689_v17 }
 0x99e   : > { %1939 = vmatmul.mubr.bf16.vlgmr.msra.gmra.mxu1 %v1691_v20  ;;  %1982 = vmatmul.mubr.bf16.vlgmr.msra.gmra.mxu0 %v1691_v20 }
 0x99f   : > { %2780 = vmatpush3.bf16.msra.mxu1 %v3032_v24  ;;  %2802 = vmatpush3.bf16.msra.mxu0 %v3033_v25 }
 0x9a0   : > { %2781 = vmatprep.subr.bf16.mxu1 %v3034_v27  ;;  %2803 = vmatprep.subr.bf16.mxu0 %v3035_v28 }
 0x9a3   : > { %2782 = vmatpush3.bf16.msra.mxu1 %v3036_v29  ;;  %2804 = vmatpush3.bf16.msra.mxu0 %v3037_v30 }
 0x9a4   : > { %2783 = vmatprep.subr.bf16.mxu1 %v3038_v32  ;;  %2805 = vmatprep.subr.bf16.mxu0 %v3039_v33 }
 0x9a7   : > { %2784 = vmatpush3.bf16.msra.mxu1 %v3040_v26  ;;  %2806 = vmatpush3.bf16.msra.mxu0 %v3041_v34 }
 0x9a8   : > { %2785 = vmatprep.subr.bf16.mxu1 %v3042_v35  ;;  %2807 = vmatprep.subr.bf16.mxu0 %v3043_v36 }
 0x9ab   : > { %2786 = vmatpush3.bf16.msra.mxu1 %v3044_v37  ;;  %2808 = vmatpush3.bf16.msra.mxu0 %v3045_v38 }
 0x9ac   : > { %2787 = vmatprep.subr.bf16.mxu1 %v3046_v39  ;;  %2809 = vmatprep.subr.bf16.mxu0 %v3047_v22 }
 0x9af   : > { %2788 = vmatpush3.bf16.msra.mxu1 %v3048_v40  ;;  %2810 = vmatpush3.bf16.msra.mxu0 %v3049_v41 }
 0x9b0   : > { %2789 = vmatprep.subr.bf16.mxu1 %v3050_v42  ;;  %2811 = vmatprep.subr.bf16.mxu0 %v3051_v43 }
 0x9b3   : > { %2790 = vmatpush3.bf16.msra.mxu1 %v3052_v44  ;;  %2812 = vmatpush3.bf16.msra.mxu0 %v3053_v45 }
 0x9b4   : > { %2791 = vmatprep.subr.bf16.mxu1 %v3054_v46  ;;  %2813 = vmatprep.subr.bf16.mxu0 %v3055_v47 }
 0x9b7   : > { %2792 = vmatpush3.bf16.msra.mxu1 %v3056_v48  ;;  %2814 = vmatpush3.bf16.msra.mxu0 %v3057_v49 }
 0x9b8   : > { %2793 = vmatprep.subr.bf16.mxu1 %v3058_v50  ;;  %2815 = vmatprep.subr.bf16.mxu0 %v3059_v51 }
 0x9bb   : > { %2794 = vmatpush3.bf16.msra.mxu1 %v3060_v52  ;;  %2816 = vmatpush3.bf16.msra.mxu0 %v3061_v53 }
 0xa5e   : > { %v1940_v61 = vpop.f32.mrf.mxu1  ;;  %v1983_v63 = vpop.f32.mrf.mxu0 }
 0xa5f   : > { %v3599_v0 = vadd.f32 %v1940_v61, %v1729_v56  ;;  %v3601_v1 = vadd.f32 %v1983_v63, %v1737_v57 }
 0xa60   : > { %v1942_v3 = vpop.f32.mrf.mxu1  ;;  %v1985_v5 = vpop.f32.mrf.mxu0 }
 0xa61   : > { %v2000_v6 = vmul.f32 0.044715, %v3599_v0  ;;  %v2002_v9 = vmul.f32 0.044715, %v3601_v1  ;;  %v1943_v8 = vadd.f32 %v1942_v3, %v1733_v60  ;;  %v3605_v10 = vadd.f32 %v1985_v5, %v1741_v7 }
 0xa62   : > { %v1944_v4 = vpop.f32.mrf.mxu1  ;;  %v1987_v11 = vpop.f32.mrf.mxu0  ;;  %v1992_v3 = vmul.f32 0.5, %v3599_v0 }
 0xa63   : > { %v2008_v58 = vmul.f32 %v2000_v6, %v3599_v0  ;;  %v2010_v59 = vmul.f32 %v2002_v9, %v3601_v1  ;;  %v2001_v19 = vmul.f32 0.044715, %v1943_v8  ;;  %v2003_v12 = vmul.f32 0.044715, %v3605_v10 }
 0xa64   : > { %v1945_v2 = vadd.f32 %v1944_v4, %v1729_v56  ;;  %v3610_v13 = vadd.f32 %v1987_v11, %v1737_v57  ;;  %v1946_v14 = vpop.f32.mrf.mxu1  ;;  %v1989_v15 = vpop.f32.mrf.mxu0  ;;  %v1993_v61 = vmul.f32 0.5, %v1943_v8 }
 0xa65   : > { %v2016_v16 = vmul.f32 %v2008_v58, %v3599_v0  ;;  %v2018_v17 = vmul.f32 %v2010_v59, %v3601_v1  ;;  %v2009_v18 = vmul.f32 %v2001_v19, %v1943_v8  ;;  %v2011_v20 = vmul.f32 %v2003_v12, %v3605_v10 }
 0xa66   : > { %v2004_v21 = vmul.f32 0.044715, %v1945_v2  ;;  %v2006_v23 = vmul.f32 0.044715, %v3610_v13  ;;  %v1947_v24 = vadd.f32 %v1946_v14, %v1733_v60  ;;  %v1990_v25 = vadd.f32 %v1989_v15, %v1741_v7 }
 0xa67   : > { %v2024_v27 = vadd.f32 %v2016_v16, %v3599_v0  ;;  %v2026_v28 = vadd.f32 %v2018_v17, %v3601_v1  ;;  %v2017_v29 = vmul.f32 %v2009_v18, %v1943_v8  ;;  %v2019_v30 = vmul.f32 %v2011_v20, %v3605_v10 }
 0xa68   : > { %v2012_v32 = vmul.f32 %v2004_v21, %v1945_v2  ;;  %v2014_v33 = vmul.f32 %v2006_v23, %v3610_v13  ;;  %v2005_v26 = vmul.f32 0.044715, %v1947_v24  ;;  %v2007_v34 = vmul.f32 0.044715, %v1990_v25 }
 0xa69   : > { %v2032_v35 = vmul.f32 0.7978846, %v2024_v27  ;;  %v2034_v36 = vmul.f32 0.7978846, %v2026_v28  ;;  %v2025_v37 = vadd.f32 %v2017_v29, %v1943_v8  ;;  %v2027_v42 = vadd.f32 %v2019_v30, %v3605_v10 }
 0xa6a   : > { %v2020_v38 = vmul.f32 %v2012_v32, %v1945_v2  ;;  %v2022_v39 = vmul.f32 %v2014_v33, %v3610_v13  ;;  %v2013_v22 = vmul.f32 %v2005_v26, %v1947_v24  ;;  %v2015_v40 = vmul.f32 %v2007_v34, %v1990_v25 }
 0xa6b   : > { %v2033_v41 = vmul.f32 0.7978846, %v2025_v37  ;;  %3102 = vtanh.f32 %v2032_v35  ;;  %v2035_v47 = vmul.f32 0.7978846, %v2027_v42  ;;  %v1996_v4 = vmul.f32 0.5, %v1945_v2 }
 0xa6c   : > { %v2028_v43 = vadd.f32 %v2020_v38, %v1945_v2  ;;  %v2030_v44 = vadd.f32 %v2022_v39, %v3610_v13  ;;  %v2021_v45 = vmul.f32 %v2013_v22, %v1947_v24  ;;  %3104 = vtanh.f32 %v2034_v36  ;;  %v2735_v39 = vld [vmem:[%s684_s19] ss:$0 sm:$0xff] }
 0xa6d   : > { %v2023_v46 = vmul.f32 %v2015_v40, %v1990_v25  ;;  %3106 = vtanh.f32 %v2033_v41  ;;  %v1997_v19 = vmul.f32 0.5, %v1947_v24  ;;  %v1998_v14 = vmul.f32 0.5, %v3610_v13 }
 0xa6e   : > { %v2036_v48 = vmul.f32 0.7978846, %v2028_v43  ;;  %v2038_v49 = vmul.f32 0.7978846, %v2030_v44  ;;  %v2029_v50 = vadd.f32 %v2021_v45, %v1947_v24  ;;  %3108 = vtanh.f32 %v2035_v47 }
 0xa6f   : > { %v2031_v51 = vadd.f32 %v2023_v46, %v1990_v25  ;;  %v1995_v16 = vmul.f32 0.5, %v3605_v10  ;;  %v1999_v17 = vmul.f32 0.5, %v1990_v25  ;;  %v1994_v0 = vmul.f32 0.5, %v3601_v1 }
 0xa70   : > { %3110 = vtanh.f32 %v2036_v48  ;;  %v2037_v52 = vmul.f32 0.7978846, %v2029_v50 }
 0xa71   : > { %3112 = vtanh.f32 %v2038_v49  ;;  %v2039_v53 = vmul.f32 0.7978846, %v2031_v51 }
 0xa72   : > { %3114 = vtanh.f32 %v2037_v52 }
 0xa73   : > { %3116 = vtanh.f32 %v2039_v53 }
 0xa78   : > { %v3103_v54 = vpop.eup %3102 }
 0xa79   : > { %v3105_v55 = vpop.eup %3104  ;;  %v2048_v11 = vadd.f32 1.0, %v3103_v54 }
 0xa7a   : > { %v3107_v56 = vpop.eup %3106  ;;  %v2050_v15 = vadd.f32 1.0, %v3105_v55 }
 0xa7b   : > { %v3109_v57 = vpop.eup %3108  ;;  %v2049_v63 = vadd.f32 1.0, %v3107_v56  ;;  %v2056_v28 = vmul.f32 %v2048_v11, %v1992_v3 }
 0xa7c   : > { %v2051_v9 = vadd.f32 1.0, %v3109_v57  ;;  %v2058_v30 = vmul.f32 %v2050_v15, %v1994_v0 }
 0xa7d   : > { %v3111_v60 = vpop.eup %3110  ;;  %v2057_v20 = vmul.f32 %v2049_v63, %v1993_v61 }
 0xa7e   : > { %v3113_v7 = vpop.eup %3112  ;;  %v2052_v5 = vadd.f32 1.0, %v3111_v60  ;;  %v2059_v27 = vmul.f32 %v2051_v9, %v1995_v16 }
 0xa7f   : > { %v3115_v6 = vpop.eup %3114  ;;  %v2054_v58 = vadd.f32 1.0, %v3113_v7 }
 0xa80   : > { %v3117_v59 = vpop.eup %3116  ;;  %v2053_v12 = vadd.f32 1.0, %v3115_v6  ;;  %v2060_v8 = vmul.f32 %v2052_v5, %v1996_v4 }
 0xa81   : > { %v2055_v18 = vadd.f32 1.0, %v3117_v59  ;;  %v2062_v23 = vmul.f32 %v2054_v58, %v1998_v14 }
 0xa82   : > { %v2061_v21 = vmul.f32 %v2053_v12, %v1997_v19  ;;  %v2064_v32 = vpack.c.bf16 %v2060_v8, %v2056_v28 }
 0xa83   : > { %v2063_v2 = vmul.f32 %v2055_v18, %v1999_v17  ;;  %v2066_v13 = vpack.c.bf16 %v2062_v23, %v2058_v30 }
 0xa84   : > { %v2065_v29 = vpack.c.bf16 %v2061_v21, %v2057_v20 }
 0xa85   : > { %v2067_v24 = vpack.c.bf16 %v2063_v2, %v2059_v27 }
 0xa86   : > { %2356 = vmatprep.mubr.bf16.mxu1 %v2065_v29 }
 0xa87   : > { %2397 = vmatprep.mubr.bf16.mxu0 %v2067_v24  ;;  %2357 = vmatmul.mubr.bf16.vlgmr.msra.gmra.mxu1 %v2064_v32 }
 0xa88   : > { %2398 = vmatmul.mubr.bf16.vlgmr.msra.gmra.mxu0 %v2066_v13 }
 0xb47   : > { %v2795_v10 = vpop.f32.mrf.mxu1 }
 0xb48   : > { %v2817_v25 = vpop.f32.mrf.mxu0 }
 0xb49   : > { %v2796_v33 = vpop.f32.mrf.mxu1 }
 0xb4a   : > { %v2797_v26 = vadd.f32 %v2796_v33, %v2795_v10  ;;  %v2818_v34 = vpop.f32.mrf.mxu0 }
 0xb4b   : > { %v2819_v1 = vadd.f32 %v2818_v34, %v2817_v25  ;;  %v2798_v35 = vpop.f32.mrf.mxu1 }
 0xb4c   : > { %v2820_v36 = vpop.f32.mrf.mxu0 }
 0xb4d   : > { %v2400_v37 = vadd.f32 %v2819_v1, %v2797_v26  ;;  %v2799_v38 = vpop.f32.mrf.mxu1 }
 0xb4e   : > { %v2800_v22 = vadd.f32 %v2799_v38, %v2798_v35  ;;  %v2821_v40 = vpop.f32.mrf.mxu0 }
 0xb4f   : > { %v2406_v41 = vadd.f32 %v2400_v37, %v3497_v62  ;;  %v2822_v42 = vadd.f32 %v2821_v40, %v2820_v36 }
 0xb51   : > { %v2415_v43 = vadd.f32 %v2735_v39, %v2406_v41  ;;  %v2403_v44 = vadd.f32 %v2822_v42, %v2800_v22  ;;  %2420 = sbr.rel (%p2736_p5) target bundleno = 3219 (0xc93), region = 92 }
 0xb53   : > { %v2407_v45 = vadd.f32 %v2403_v44, %v3500_v31 }
 0xb55   : > { %v2416_v46 = vadd.f32 %v2735_v39, %v2407_v45 }
 0xb56   : > { %v2737_v3 = vld [vmem:[%s3691_s0] ss:$0 sm:$0xff] }
 0xb57   : > { %v2425_v47 = vsel %vm702_vm0, %v2416_v46, 0.0  ;;  %v2738_v6 = vld [vmem:[%s3692_s15] ss:$0 sm:$0xff] }
 0xb58   : > { %2426 = vadd.xlane.f32.xlu0 %v2425_v47 }
 0xb5c   : > { %2423 = vadd.xlane.f32.xlu0 %v2415_v43 }
 0xbe1   : > { %v2427_v48 = vpop.xlane.xlu0 %2426 }
 0xbe2   : > { %v2429_v49 = vmul.f32 0.0078125, %v2427_v48 }
 0xbe4   : > { %v2431_v52 = vsub.f32 %v2416_v46, %v2429_v49 }
 0xbe5   : > { %v2424_v50 = vpop.xlane.xlu0 %2423 }
 0xbe6   : > { %v2428_v51 = vmul.f32 0.0078125, %v2424_v50  ;;  %v2433_v54 = vmul.f32 %v2431_v52, %v2431_v52 }
 0xbe8   : > { %v2430_v53 = vsub.f32 %v2415_v43, %v2428_v51  ;;  %v2436_v55 = vsel %vm702_vm0, %v2433_v54, 0.0 }
 0xbea   : > { %v2432_v62 = vmul.f32 %v2430_v53, %v2430_v53 }
 0xbec   : > { %2434 = vadd.xlane.f32.xlu1 %v2432_v62 }
 0xbf0   : > { %2437 = vadd.xlane.f32.xlu1 %v2436_v55 }
 0xc75   : > { %v2435_v31 = vpop.xlane.xlu1 %2434 }
 0xc76   : > { %v2439_v56 = vmul.f32 0.0078125, %v2435_v31 }
 0xc78   : > { %v2441_v57 = vadd.f32 1e-06, %v2439_v56 }
 0xc79   : > { %v2438_v60 = vpop.xlane.xlu1 %2437 }
 0xc7a   : > { %3120 = vrsqrt.f32 %v2441_v57  ;;  %v2440_v7 = vmul.f32 0.0078125, %v2438_v60 }
 0xc7c   : > { %v2442_v61 = vadd.f32 1e-06, %v2440_v7 }
 0xc7e   : > { %3122 = vrsqrt.f32 %v2442_v61 }
 0xc87   : > { %v3121_v63 = vpop.eup %3120 }
 0xc88   : > { %v2445_v5 = vmul.f32 %v3121_v63, %v2430_v53 }
 0xc8a   : > { %v2453_v9 = vmul.f32 %v2737_v3, %v2445_v5 }
 0xc8b   : > { %v3123_v4 = vpop.eup %3122 }
 0xc8c   : > { %v2461_v11 = vadd.f32 %v2738_v6, %v2453_v9  ;;  %v2446_v58 = vmul.f32 %v3123_v4, %v2431_v52 }
 0xc8e   : > { %2463 = vst [vmem:[%s3693_s18] sm:$0xff] %v2461_v11  ;;  %v2454_v59 = vmul.f32 %v2737_v3, %v2446_v58 }
 0xc90   : > { %v2462_v19 = vadd.f32 %v2738_v6, %v2454_v59 }
 0xc92   : > { %2464 = vst [vmem:[%s3693_s18 + $0x8] sm:$0x3f] %v2462_v19 }
 0xc93 PF: > { %p2739_p6 = scmp.ge.s32.totalorder %s3229_s22, 11 }
 0xc95   : > { %2468 = sbr.rel (%p2739_p6) target bundleno = 3227 (0xc9b), region = 96 }
 0xc9a   : > { %2469 = vst [vmem:[#allocation2] sm:$0xff] %v2415_v43  ;;  %2470 = vst [vmem:[#allocation2 + $0x8] sm:$0x3f] %v2416_v46 }
 0xc9b PF: > { %s3694_s16 = sld [smem:[#allocation3_spill]] }
 0xca1   : > { %s26_s21 = sadd.s32 1, %s3694_s16  }
 0xca2   : > { %p23_p7 = scmp.ge.s32.totalorder %s26_s21, 14  }
 0xca4   :  { %25 = sbr.rel (!%p23_p7) target bundleno = 8 (0x8), region = 155 }

</bundles_post_ra>
